<compile_context>
chip_gen: v7x
topology: tpu7x:2x2x1
jax: 0.10.0
libtpu: 0.0.40
codegen_flags: <defaults>
</compile_context>

<pallas_src>
import functools
import math

import jax
import jax.numpy as jnp
from jax import lax
from jax.experimental import pallas as pl
from jax.experimental.pallas import tpu as pltpu

_NEG_INF = -1e30


# ------------------------------ fused kernel ------------------------------- #

def _encoder_layer_kernel(*refs, nhead, eps, has_pos, has_mask, kv_len):
    it = iter(refs)
    x_q_ref = next(it)                       # (1, TQ, D) f32 query-tile rows
    x_kv_ref = next(it)                      # (1, S_pad, D) f32 full sequence
    pos_q_ref = next(it) if has_pos else None
    pos_kv_ref = next(it) if has_pos else None
    mask_ref = next(it) if has_mask else None
    (w_q_ref, b_q_ref, w_k_ref, b_k_ref, w_v_ref, b_v_ref,
     w_o_ref, b_o_ref, ln1_g_ref, ln1_b_ref, w1_ref, b1_ref,
     w2_ref, b2_ref, ln2_g_ref, ln2_b_ref,
     o_ref, k_scr, v_scr) = tuple(it)

    qi = pl.program_id(1)
    D = x_q_ref.shape[2]
    H = nhead
    Dh = D // H
    S_kv = k_scr.shape[0]

    def mm(a_bf16, w_bf16):
        # bf16 operands, f32 MXU accumulation.
        return jnp.dot(a_bf16, w_bf16, preferred_element_type=jnp.float32)

    def layernorm(z, g, b):
        mu = jnp.mean(z, axis=-1, keepdims=True)
        var = jnp.mean(jnp.square(z - mu), axis=-1, keepdims=True)
        return (z - mu) * lax.rsqrt(var + eps) * g + b

    # ---- K / V projections: once per batch element, cached in VMEM scratch.
    @pl.when(qi == 0)
    def _():
        xkv = x_kv_ref[0]                                        # (S_kv, D) f32
        if has_pos:
            kin = xkv + pos_kv_ref[0]                            # key = src+pos
        else:
            kin = xkv
        kf = mm(kin.astype(jnp.bfloat16), w_k_ref[...]) + b_k_ref[...]
        vf = mm(xkv.astype(jnp.bfloat16), w_v_ref[...]) + b_v_ref[...]
        k_scr[...] = kf.astype(k_scr.dtype)
        v_scr[...] = vf.astype(v_scr.dtype)

    # ---- Q projection for this query tile (1/sqrt(Dh) folded into w_q/b_q).
    xq = x_q_ref[0]                                              # (TQ, D) f32
    if has_pos:
        qin = xq + pos_q_ref[0]
    else:
        qin = xq
    q = (mm(qin.astype(jnp.bfloat16), w_q_ref[...]) + b_q_ref[...]
         ).astype(jnp.bfloat16)                                  # (TQ, D)
    k = k_scr[...]                                               # (S_kv, D) bf16
    v = v_scr[...]                                               # (S_kv, D) bf16
    TQ = q.shape[0]

    if has_mask:
        mbias = mask_ref[...]                                    # (TQ, S_kv) f32
    if kv_len < S_kv:
        # Static key-padding bias for sequence rows added by query-tile padding.
        kidx = lax.broadcasted_iota(jnp.int32, (1, S_kv), 1)
        kpad = jnp.where(kidx < kv_len, 0.0, _NEG_INF)

    # ---- Multi-head attention: per-head lane-slice loop, out-proj folded ----
    attn = jnp.zeros((TQ, D), jnp.float32)
    for h in range(H):
        lo, hi = h * Dh, (h + 1) * Dh
        qh = q[:, lo:hi]                                         # (TQ, Dh) bf16
        kh = k[:, lo:hi]                                         # (S_kv, Dh)
        vh = v[:, lo:hi]                                         # (S_kv, Dh)
        s = jnp.einsum('qd,kd->qk', qh, kh,
                       preferred_element_type=jnp.float32)       # (TQ, S_kv)
        if has_mask:
            s = s + mbias
        if kv_len < S_kv:
            s = s + kpad
        mx = jnp.max(s, axis=-1, keepdims=True)
        e = jnp.exp(s - mx)
        p = e * pl.reciprocal(jnp.sum(e, axis=-1, keepdims=True), approx=True)
        oh = mm(p.astype(jnp.bfloat16), vh)                      # (TQ, Dh) f32
        attn = attn + mm(oh.astype(jnp.bfloat16), w_o_ref[lo:hi, :])
    attn = attn + b_o_ref[...]

    # ---- residual + LayerNorm1 (dropout1 = identity) ------------------------
    y = layernorm(xq + attn, ln1_g_ref[...], ln1_b_ref[...])

    # ---- FFN: linear1 + ReLU (bf16 hidden), linear2 (dropout = identity) ----
    hid = jnp.maximum(mm(y.astype(jnp.bfloat16), w1_ref[...]) + b1_ref[...],
                      0.0).astype(jnp.bfloat16)                  # (TQ, F)
    ff = mm(hid, w2_ref[...]) + b2_ref[...]

    # ---- residual + LayerNorm2 ----------------------------------------------
    out = layernorm(y + ff, ln2_g_ref[...], ln2_b_ref[...])
    o_ref[0] = out.astype(o_ref.dtype)


# ------------------------------ layer wrapper ------------------------------ #

def _default_vmem_limit_bytes():
    # ~100 MiB on 128-MiB parts (v5e/v6e), ~48 MiB on v7x (64 MiB physical).
    cap = 128 * 1024 * 1024
    try:
        cap = int(getattr(pltpu.get_tpu_info(), "vmem_capacity_bytes", cap))
    except Exception:
        pass
    return int(max(32 * 1024 * 1024,
                   min(100 * 1024 * 1024, cap - 16 * 1024 * 1024)))


def transformer_encoder_layer(src, params, *, nhead, pos=None, src_mask=None,
                              eps=1e-5, q_block=None, vmem_limit_bytes=None):
    """TransformerEncoderLayer.forward_post (normalize_before=False, eval).

    src:      (S, B, D) sequence-first (PyTorch layout).
    pos:      optional (S, B, D) positional embedding (q = k = src + pos).
    src_mask: optional (S, S) attention mask; additive float, or bool with
              True = masked (PyTorch convention).
    params:   output of prepare_params() (bf16 weights, scale folded into Q).
    Returns (S, B, D) float32.
    """
    S, B, D = src.shape
    assert D % nhead == 0, "d_model must be divisible by nhead"

    has_pos = pos is not None
    has_mask = src_mask is not None

    q_blk = q_block if q_block is not None else min(128, S)
    q_blk = min(q_blk, S)
    n_q = pl.cdiv(S, q_blk)
    S_pad = n_q * q_blk
    if q_blk < S_pad:
        assert q_blk % 8 == 0, "q_block must be a multiple of 8 (or == seq len)"

    def pad_seq(a_bsd):
        if S_pad == S:
            return a_bsd
        return jnp.pad(a_bsd, ((0, 0), (0, S_pad - S), (0, 0)))

    x_b = pad_seq(jnp.transpose(src, (1, 0, 2)).astype(jnp.float32))  # (B,Sp,D)

    q_spec = pl.BlockSpec((1, q_blk, D), lambda b, qi: (b, qi, 0))
    kv_spec = pl.BlockSpec((1, S_pad, D), lambda b, qi: (b, 0, 0))

    inputs = [x_b, x_b]              # same array: query-tile view + full-kv view
    in_specs = [q_spec, kv_spec]

    if has_pos:
        pos_b = pad_seq(jnp.transpose(pos, (1, 0, 2)).astype(jnp.float32))
        inputs += [pos_b, pos_b]
        in_specs += [q_spec, kv_spec]

    if has_mask:
        m = src_mask
        if m.dtype == jnp.bool_:
            m = jnp.where(m, _NEG_INF, 0.0)
        m = m.astype(jnp.float32)
        if S_pad != S:
            m = jnp.pad(m, ((0, S_pad - S), (0, S_pad - S)))
        inputs.append(m)
        in_specs.append(pl.BlockSpec((q_blk, S_pad), lambda b, qi: (qi, 0)))

    weight_order = ("w_q", "b_q", "w_k", "b_k", "w_v", "b_v", "w_o", "b_o",
                    "ln1_g", "ln1_b", "w1", "b1", "w2", "b2", "ln2_g", "ln2_b")
    for name in weight_order:
        w = params[name]
        inputs.append(w)
        in_specs.append(
            pl.BlockSpec(w.shape, lambda b, qi, _nd=w.ndim: (0,) * _nd))

    F = params["w1"].shape[1]
    flops = int(8 * B * S * D * D + 4 * B * S * S * D + 4 * B * S * D * F)
    transcendentals = int(B * nhead * S * S + 3 * B * S)
    bytes_accessed = int(sum(a.size * a.dtype.itemsize for a in inputs)
                         + B * S_pad * D * 4)

    if vmem_limit_bytes is None:
        vmem_limit_bytes = _default_vmem_limit_bytes()

    kernel = functools.partial(
        _encoder_layer_kernel, nhead=nhead, eps=eps,
        has_pos=has_pos, has_mask=has_mask, kv_len=S)

    out_b = pl.pallas_call(
        kernel,
        grid=(B, n_q),
        in_specs=in_specs,
        out_specs=pl.BlockSpec((1, q_blk, D), lambda b, qi: (b, qi, 0)),
        out_shape=jax.ShapeDtypeStruct((B, S_pad, D), jnp.float32),
        scratch_shapes=[pltpu.VMEM((S_pad, D), jnp.bfloat16),   # cached K
                        pltpu.VMEM((S_pad, D), jnp.bfloat16)],  # cached V
        compiler_params=pltpu.CompilerParams(
            dimension_semantics=("parallel", "arbitrary"),
            vmem_limit_bytes=vmem_limit_bytes),
        cost_estimate=pl.CostEstimate(flops=flops,
                                      transcendentals=transcendentals,
                                      bytes_accessed=bytes_accessed),
    )(*inputs)

    return jnp.transpose(out_b[:, :S, :], (1, 0, 2))


# ------------------------------ parameters --------------------------------- #

def init_encoder_layer_params(key, d_model, dim_feedforward):
    """Raw f32 parameters in (in_features, out_features) math layout.

    Mapping from the PyTorch module's state_dict (transpose once at load time):
      w_q = in_proj_weight[:D].T        b_q = in_proj_bias[:D]
      w_k = in_proj_weight[D:2D].T      b_k = in_proj_bias[D:2D]
      w_v = in_proj_weight[2D:].T       b_v = in_proj_bias[2D:]
      w_o = out_proj.weight.T           b_o = out_proj.bias
      w1/w2 = linear1.weight.T / linear2.weight.T,  b1/b2 = linear biases
      ln{1,2}_g / ln{1,2}_b = norm{1,2}.weight / .bias
    """
    D, F = d_model, dim_feedforward
    ks = jax.random.split(key, 12)

    def xavier(k, fan_in, fan_out):
        lim = math.sqrt(6.0 / (fan_in + fan_out))
        return jax.random.uniform(k, (fan_in, fan_out), jnp.float32, -lim, lim)

    def bias(k, n):
        return jax.random.uniform(k, (n,), jnp.float32, -0.1, 0.1)

    return {
        "w_q": xavier(ks[0], D, D), "b_q": bias(ks[1], D),
        "w_k": xavier(ks[2], D, D), "b_k": bias(ks[3], D),
        "w_v": xavier(ks[4], D, D), "b_v": bias(ks[5], D),
        "w_o": xavier(ks[6], D, D), "b_o": bias(ks[7], D),
        "ln1_g": jnp.ones((D,), jnp.float32),
        "ln1_b": jnp.zeros((D,), jnp.float32),
        "w1": xavier(ks[8], D, F), "b1": bias(ks[9], F),
        "w2": xavier(ks[10], F, D), "b2": bias(ks[11], D),
        "ln2_g": jnp.ones((D,), jnp.float32),
        "ln2_b": jnp.zeros((D,), jnp.float32),
    }


def prepare_params(params, nhead):
    """One-time conversion to kernel-ready params.

    * 1/sqrt(head_dim) folded into w_q AND b_q (PyTorch scales q after bias).
    * Weight matrices cast to bf16 (halves weight DMA + resident VMEM).
    * Biases / LayerNorm params stay f32, reshaped to (1, N) rows.
    """
    D = params["w_q"].shape[0]
    scale = 1.0 / math.sqrt(D // nhead)
    out = {}
    for name, val in params.items():
        v = val
        if name in ("w_q", "b_q"):
            v = v * scale
        if name in ("w_q", "w_k", "w_v", "w_o", "w1", "w2"):
            v = v.astype(jnp.bfloat16)
        else:
            v = v.astype(jnp.float32).reshape(1, -1)
        out[name] = v
    return out


# --------------------------- pure-JAX reference ---------------------------- #

def reference_encoder_layer(src, params, *, nhead, pos=None, src_mask=None,
                            eps=1e-5):
    """f32 reference of TransformerEncoderLayer.forward_post (eval mode)."""
    S, B, D = src.shape
    H, Dh = nhead, D // nhead
    scale = 1.0 / math.sqrt(Dh)
    x = src.astype(jnp.float32)
    qk_in = x + pos.astype(jnp.float32) if pos is not None else x
    lin = lambda a, w, b: a @ w + b
    q = lin(qk_in, params["w_q"], params["b_q"]) * scale
    k = lin(qk_in, params["w_k"], params["b_k"])
    v = lin(x, params["w_v"], params["b_v"])
    split = lambda t: t.reshape(S, B, H, Dh).transpose(1, 2, 0, 3)
    qh, kh, vh = split(q), split(k), split(v)
    s = jnp.einsum('bhqd,bhkd->bhqk', qh, kh)
    if src_mask is not None:
        m = src_mask
        if m.dtype == jnp.bool_:
            m = jnp.where(m, _NEG_INF, 0.0)
        s = s + m.astype(jnp.float32)[None, None]
    p = jax.nn.softmax(s, axis=-1)
    oh = jnp.einsum('bhqk,bhkd->bhqd', p, vh)
    attn = lin(oh.transpose(2, 0, 1, 3).reshape(S, B, D),
               params["w_o"], params["b_o"])

    def ln(z, g, b):
        mu = z.mean(-1, keepdims=True)
        var = ((z - mu) ** 2).mean(-1, keepdims=True)
        return (z - mu) / jnp.sqrt(var + eps) * g + b

    y = ln(x + attn, params["ln1_g"], params["ln1_b"])
    h = jax.nn.relu(lin(y, params["w1"], params["b1"]))
    return ln(y + lin(h, params["w2"], params["b2"]),
              params["ln2_g"], params["ln2_b"])


# ---------------------------------- main ----------------------------------- #

if __name__ == "__main__":
    d_model = 32
    nhead = 4
    dim_ff = 64

    root = jax.random.PRNGKey(0)
    kp, k1, k2, k3, k4, k5 = jax.random.split(root, 6)

    raw = init_encoder_layer_params(kp, d_model, dim_ff)
    prepped = prepare_params(raw, nhead)

    # Config 1: pos embedding, no mask, single query tile (S=8, B=2).
    src1 = jax.random.normal(k1, (8, 2, d_model), jnp.float32)
    pos1 = jax.random.normal(k2, (8, 2, d_model), jnp.float32)
    fwd1 = jax.jit(functools.partial(transformer_encoder_layer, nhead=nhead))
    out1 = jax.block_until_ready(fwd1(src1, prepped, pos=pos1))
    ref1 = reference_encoder_layer(src1, raw, nhead=nhead, pos=pos1)

    # Config 2: pos + bool mask, multi query tiles with key padding
    # (S=20 padded to 24 with q_block=8), B=1.
    S2 = 20
    src2 = jax.random.normal(k3, (S2, 1, d_model), jnp.float32)
    pos2 = jax.random.normal(k4, (S2, 1, d_model), jnp.float32)
    mask2 = jax.random.bernoulli(k5, 0.25, (S2, S2)) & ~jnp.eye(S2, dtype=bool)
    fwd2 = jax.jit(functools.partial(transformer_encoder_layer, nhead=nhead,
                                     q_block=8))
    out2 = jax.block_until_ready(fwd2(src2, prepped, pos=pos2, src_mask=mask2))
    ref2 = reference_encoder_layer(src2, raw, nhead=nhead, pos=pos2,
                                   src_mask=mask2)

    # Config 3: pos=None, no mask (static specialization path).
    fwd3 = jax.jit(functools.partial(transformer_encoder_layer, nhead=nhead))
    out3 = jax.block_until_ready(fwd3(src1, prepped))
    ref3 = reference_encoder_layer(src1, raw, nhead=nhead)

    for o, r in ((out1, ref1), (out2, ref2), (out3, ref3)):
        assert o.shape == r.shape, (o.shape, r.shape)
        assert bool(jnp.all(jnp.isfinite(o)))
        err = float(jnp.max(jnp.abs(o - r)))
        # bf16 matmuls + approx reciprocal vs f32 reference -> loose tolerance.
        assert err < 0.15, f"max abs err {err}"

    print("KERNEL_OK")
</pallas_src>

<mosaic_0001>
module attributes {stable_mosaic.version = 11 : i64} {
  func.func @_encoder_layer_kernel(%arg0: i32, %arg1: i32, %arg2: memref<1x8x32xf32, #tpu.memory_space<vmem>>, %arg3: memref<1x8x32xf32, #tpu.memory_space<vmem>>, %arg4: memref<1x8x32xf32, #tpu.memory_space<vmem>>, %arg5: memref<1x8x32xf32, #tpu.memory_space<vmem>>, %arg6: memref<32x32xbf16, #tpu.memory_space<vmem>>, %arg7: memref<1x32xf32, #tpu.memory_space<vmem>>, %arg8: memref<32x32xbf16, #tpu.memory_space<vmem>>, %arg9: memref<1x32xf32, #tpu.memory_space<vmem>>, %arg10: memref<32x32xbf16, #tpu.memory_space<vmem>>, %arg11: memref<1x32xf32, #tpu.memory_space<vmem>>, %arg12: memref<32x32xbf16, #tpu.memory_space<vmem>>, %arg13: memref<1x32xf32, #tpu.memory_space<vmem>>, %arg14: memref<1x32xf32, #tpu.memory_space<vmem>>, %arg15: memref<1x32xf32, #tpu.memory_space<vmem>>, %arg16: memref<32x64xbf16, #tpu.memory_space<vmem>>, %arg17: memref<1x64xf32, #tpu.memory_space<vmem>>, %arg18: memref<64x32xbf16, #tpu.memory_space<vmem>>, %arg19: memref<1x32xf32, #tpu.memory_space<vmem>>, %arg20: memref<1x32xf32, #tpu.memory_space<vmem>>, %arg21: memref<1x32xf32, #tpu.memory_space<vmem>>, %arg22: memref<1x8x32xf32, #tpu.memory_space<vmem>>, %arg23: memref<8x32xbf16, #tpu.memory_space<vmem>>, %arg24: memref<8x32xbf16, #tpu.memory_space<vmem>>) attributes {dimension_semantics = [#tpu.dimension_semantics<parallel>, #tpu.dimension_semantics<arbitrary>], iteration_bounds = array<i64: 2, 1>, scalar_prefetch = 0 : i64, scratch_operands = 2 : i64, tpu.core_type = #tpu.core_type<tc>, window_params = [{transform_indices = @transform_0, window_bounds = array<i64: 1, 8, 32>}, {transform_indices = @transform_1, window_bounds = array<i64: 1, 8, 32>}, {transform_indices = @transform_2, window_bounds = array<i64: 1, 8, 32>}, {transform_indices = @transform_3, window_bounds = array<i64: 1, 8, 32>}, {pipeline_mode = #tpu.pipeline_mode<synchronous>, transform_indices = @transform_4, window_bounds = array<i64: 32, 32>}, {pipeline_mode = #tpu.pipeline_mode<synchronous>, transform_indices = @transform_5, window_bounds = array<i64: 1, 32>}, {pipeline_mode = #tpu.pipeline_mode<synchronous>, transform_indices = @transform_6, window_bounds = array<i64: 32, 32>}, {pipeline_mode = #tpu.pipeline_mode<synchronous>, transform_indices = @transform_7, window_bounds = array<i64: 1, 32>}, {pipeline_mode = #tpu.pipeline_mode<synchronous>, transform_indices = @transform_8, window_bounds = array<i64: 32, 32>}, {pipeline_mode = #tpu.pipeline_mode<synchronous>, transform_indices = @transform_9, window_bounds = array<i64: 1, 32>}, {pipeline_mode = #tpu.pipeline_mode<synchronous>, transform_indices = @transform_10, window_bounds = array<i64: 32, 32>}, {pipeline_mode = #tpu.pipeline_mode<synchronous>, transform_indices = @transform_11, window_bounds = array<i64: 1, 32>}, {pipeline_mode = #tpu.pipeline_mode<synchronous>, transform_indices = @transform_12, window_bounds = array<i64: 1, 32>}, {pipeline_mode = #tpu.pipeline_mode<synchronous>, transform_indices = @transform_13, window_bounds = array<i64: 1, 32>}, {pipeline_mode = #tpu.pipeline_mode<synchronous>, transform_indices = @transform_14, window_bounds = array<i64: 32, 64>}, {pipeline_mode = #tpu.pipeline_mode<synchronous>, transform_indices = @transform_15, window_bounds = array<i64: 1, 64>}, {pipeline_mode = #tpu.pipeline_mode<synchronous>, transform_indices = @transform_16, window_bounds = array<i64: 64, 32>}, {pipeline_mode = #tpu.pipeline_mode<synchronous>, transform_indices = @transform_17, window_bounds = array<i64: 1, 32>}, {pipeline_mode = #tpu.pipeline_mode<synchronous>, transform_indices = @transform_18, window_bounds = array<i64: 1, 32>}, {pipeline_mode = #tpu.pipeline_mode<synchronous>, transform_indices = @transform_19, window_bounds = array<i64: 1, 32>}, {transform_indices = @transform_20, window_bounds = array<i64: 1, 8, 32>}]} {
    %c0_i32 = arith.constant 0 : i32
    %0 = arith.cmpi eq, %arg1, %c0_i32 : i32
    %1 = arith.extui %0 : i1 to i32
    %c0_i32_0 = arith.constant 0 : i32
    %2 = arith.cmpi ne, %1, %c0_i32_0 : i32
    scf.if %2 {
      %c0_74 = arith.constant 0 : index
      %c0_75 = arith.constant 0 : index
      %c0_76 = arith.constant 0 : index
      %168 = vector.load %arg3[%c0_74, %c0_75, %c0_76] : memref<1x8x32xf32, #tpu.memory_space<vmem>>, vector<1x8x32xf32>
      %169 = vector.shape_cast %168 : vector<1x8x32xf32> to vector<8x32xf32>
      %c0_77 = arith.constant 0 : index
      %c0_78 = arith.constant 0 : index
      %c0_79 = arith.constant 0 : index
      %170 = vector.load %arg5[%c0_77, %c0_78, %c0_79] : memref<1x8x32xf32, #tpu.memory_space<vmem>>, vector<1x8x32xf32>
      %171 = vector.shape_cast %170 : vector<1x8x32xf32> to vector<8x32xf32>
      %172 = arith.addf %169, %171 : vector<8x32xf32>
      %173 = arith.truncf %172 : vector<8x32xf32> to vector<8x32xbf16>
      %c0_80 = arith.constant 0 : index
      %c0_81 = arith.constant 0 : index
      %174 = vector.load %arg8[%c0_80, %c0_81] : memref<32x32xbf16, #tpu.memory_space<vmem>>, vector<32x32xbf16>
      %cst_82 = arith.constant dense<0.000000e+00> : vector<8x32xf32>
      %175 = tpu.matmul %173, %174, %cst_82 {dimension_numbers = #tpu.dot_dimension_numbers<[1], [0], [0], [1], [0, 0, 1, 1], [], []>} : vector<8x32xbf16>, vector<32x32xbf16>, vector<8x32xf32> -> vector<8x32xf32>
      %c0_83 = arith.constant 0 : index
      %c0_84 = arith.constant 0 : index
      %176 = vector.load %arg9[%c0_83, %c0_84] : memref<1x32xf32, #tpu.memory_space<vmem>>, vector<1x32xf32>
      %177 = vector.broadcast %176 : vector<1x32xf32> to vector<8x32xf32>
      %178 = arith.addf %175, %177 : vector<8x32xf32>
      %179 = arith.truncf %169 : vector<8x32xf32> to vector<8x32xbf16>
      %c0_85 = arith.constant 0 : index
      %c0_86 = arith.constant 0 : index
      %180 = vector.load %arg10[%c0_85, %c0_86] : memref<32x32xbf16, #tpu.memory_space<vmem>>, vector<32x32xbf16>
      %cst_87 = arith.constant dense<0.000000e+00> : vector<8x32xf32>
      %181 = tpu.matmul %179, %180, %cst_87 {dimension_numbers = #tpu.dot_dimension_numbers<[1], [0], [0], [1], [0, 0, 1, 1], [], []>} : vector<8x32xbf16>, vector<32x32xbf16>, vector<8x32xf32> -> vector<8x32xf32>
      %c0_88 = arith.constant 0 : index
      %c0_89 = arith.constant 0 : index
      %182 = vector.load %arg11[%c0_88, %c0_89] : memref<1x32xf32, #tpu.memory_space<vmem>>, vector<1x32xf32>
      %183 = vector.broadcast %182 : vector<1x32xf32> to vector<8x32xf32>
      %184 = arith.addf %181, %183 : vector<8x32xf32>
      %185 = arith.truncf %178 : vector<8x32xf32> to vector<8x32xbf16>
      %c0_90 = arith.constant 0 : index
      %c0_91 = arith.constant 0 : index
      %186 = vector.load %arg23[%c0_90, %c0_91] : memref<8x32xbf16, #tpu.memory_space<vmem>>, vector<8x32xbf16>
      tpu.vector_store %arg23[%c0_90, %c0_91], %185 {strides = array<i32>} : memref<8x32xbf16, #tpu.memory_space<vmem>>, vector<8x32xbf16>,
      %187 = arith.truncf %184 : vector<8x32xf32> to vector<8x32xbf16>
      %c0_92 = arith.constant 0 : index
      %c0_93 = arith.constant 0 : index
      %188 = vector.load %arg24[%c0_92, %c0_93] : memref<8x32xbf16, #tpu.memory_space<vmem>>, vector<8x32xbf16>
      tpu.vector_store %arg24[%c0_92, %c0_93], %187 {strides = array<i32>} : memref<8x32xbf16, #tpu.memory_space<vmem>>, vector<8x32xbf16>,
    } else {
    }
    %c0 = arith.constant 0 : index
    %c0_1 = arith.constant 0 : index
    %c0_2 = arith.constant 0 : index
    %3 = vector.load %arg2[%c0, %c0_1, %c0_2] : memref<1x8x32xf32, #tpu.memory_space<vmem>>, vector<1x8x32xf32>
    %4 = vector.shape_cast %3 : vector<1x8x32xf32> to vector<8x32xf32>
    %c0_3 = arith.constant 0 : index
    %c0_4 = arith.constant 0 : index
    %c0_5 = arith.constant 0 : index
    %5 = vector.load %arg4[%c0_3, %c0_4, %c0_5] : memref<1x8x32xf32, #tpu.memory_space<vmem>>, vector<1x8x32xf32>
    %6 = vector.shape_cast %5 : vector<1x8x32xf32> to vector<8x32xf32>
    %7 = arith.addf %4, %6 : vector<8x32xf32>
    %8 = arith.truncf %7 : vector<8x32xf32> to vector<8x32xbf16>
    %c0_6 = arith.constant 0 : index
    %c0_7 = arith.constant 0 : index
    %9 = vector.load %arg6[%c0_6, %c0_7] : memref<32x32xbf16, #tpu.memory_space<vmem>>, vector<32x32xbf16>
    %cst = arith.constant dense<0.000000e+00> : vector<8x32xf32>
    %10 = tpu.matmul %8, %9, %cst {dimension_numbers = #tpu.dot_dimension_numbers<[1], [0], [0], [1], [0, 0, 1, 1], [], []>} : vector<8x32xbf16>, vector<32x32xbf16>, vector<8x32xf32> -> vector<8x32xf32>
    %c0_8 = arith.constant 0 : index
    %c0_9 = arith.constant 0 : index
    %11 = vector.load %arg7[%c0_8, %c0_9] : memref<1x32xf32, #tpu.memory_space<vmem>>, vector<1x32xf32>
    %12 = vector.broadcast %11 : vector<1x32xf32> to vector<8x32xf32>
    %13 = arith.addf %10, %12 : vector<8x32xf32>
    %14 = arith.truncf %13 : vector<8x32xf32> to vector<8x32xbf16>
    %c0_10 = arith.constant 0 : index
    %c0_11 = arith.constant 0 : index
    %15 = vector.load %arg23[%c0_10, %c0_11] : memref<8x32xbf16, #tpu.memory_space<vmem>>, vector<8x32xbf16>
    %c0_12 = arith.constant 0 : index
    %c0_13 = arith.constant 0 : index
    %16 = vector.load %arg24[%c0_12, %c0_13] : memref<8x32xbf16, #tpu.memory_space<vmem>>, vector<8x32xbf16>
    %cst_14 = arith.constant 0.000000e+00 : f32
    %17 = vector.broadcast %cst_14 : f32 to vector<8x32xf32>
    %18 = vector.extract_strided_slice %14 {offsets = [0, 0], sizes = [8, 8], strides = [1, 1]} : vector<8x32xbf16> to vector<8x8xbf16>
    %19 = vector.extract_strided_slice %15 {offsets = [0, 0], sizes = [8, 8], strides = [1, 1]} : vector<8x32xbf16> to vector<8x8xbf16>
    %20 = vector.extract_strided_slice %16 {offsets = [0, 0], sizes = [8, 8], strides = [1, 1]} : vector<8x32xbf16> to vector<8x8xbf16>
    "tpu.trace_start"() <{level = 10 : i32, message = "qd,kd->qk"}> : () -> ()
    %cst_15 = arith.constant dense<0.000000e+00> : vector<8x8xf32>
    %21 = tpu.matmul %18, %19, %cst_15 {dimension_numbers = #tpu.dot_dimension_numbers<[1], [1], [0], [0], [0, 0, 1, 0], [], []>} : vector<8x8xbf16>, vector<8x8xbf16>, vector<8x8xf32> -> vector<8x8xf32>
    "tpu.trace_stop"() : () -> ()
    %cst_16 = arith.constant dense<0xFF800000> : vector<8xf32>
    %22 = vector.multi_reduction <maximumf>, %21, %cst_16 [1] : vector<8x8xf32> to vector<8xf32>
    %23 = vector.shape_cast %22 : vector<8xf32> to vector<8x1xf32>
    %24 = vector.broadcast %23 : vector<8x1xf32> to vector<8x8xf32>
    %25 = arith.subf %21, %24 : vector<8x8xf32>
    %26 = math.exp %25 : vector<8x8xf32>
    %cst_17 = arith.constant dense<0.000000e+00> : vector<8xf32>
    %27 = vector.multi_reduction <add>, %26, %cst_17 [1] : vector<8x8xf32> to vector<8xf32>
    %28 = vector.shape_cast %27 : vector<8xf32> to vector<8x1xf32>
    %29 = tpu.reciprocal %28 {approx = true} : vector<8x1xf32> -> vector<8x1xf32>
    %30 = vector.broadcast %29 : vector<8x1xf32> to vector<8x8xf32>
    %31 = arith.mulf %26, %30 : vector<8x8xf32>
    %32 = arith.truncf %31 : vector<8x8xf32> to vector<8x8xbf16>
    %cst_18 = arith.constant dense<0.000000e+00> : vector<8x8xf32>
    %33 = tpu.matmul %32, %20, %cst_18 {dimension_numbers = #tpu.dot_dimension_numbers<[1], [0], [0], [1], [0, 0, 1, 1], [], []>} : vector<8x8xbf16>, vector<8x8xbf16>, vector<8x8xf32> -> vector<8x8xf32>
    %34 = arith.truncf %33 : vector<8x8xf32> to vector<8x8xbf16>
    %c0_19 = arith.constant 0 : index
    %c0_20 = arith.constant 0 : index
    %35 = vector.load %arg12[%c0_19, %c0_20] : memref<32x32xbf16, #tpu.memory_space<vmem>>, vector<8x32xbf16>
    %cst_21 = arith.constant dense<0.000000e+00> : vector<8x32xf32>
    %36 = tpu.matmul %34, %35, %cst_21 {dimension_numbers = #tpu.dot_dimension_numbers<[1], [0], [0], [1], [0, 0, 1, 1], [], []>} : vector<8x8xbf16>, vector<8x32xbf16>, vector<8x32xf32> -> vector<8x32xf32>
    %37 = arith.addf %17, %36 : vector<8x32xf32>
    %38 = vector.extract_strided_slice %14 {offsets = [0, 8], sizes = [8, 8], strides = [1, 1]} : vector<8x32xbf16> to vector<8x8xbf16>
    %39 = vector.extract_strided_slice %15 {offsets = [0, 8], sizes = [8, 8], strides = [1, 1]} : vector<8x32xbf16> to vector<8x8xbf16>
    %40 = vector.extract_strided_slice %16 {offsets = [0, 8], sizes = [8, 8], strides = [1, 1]} : vector<8x32xbf16> to vector<8x8xbf16>
    "tpu.trace_start"() <{level = 10 : i32, message = "qd,kd->qk"}> : () -> ()
    %cst_22 = arith.constant dense<0.000000e+00> : vector<8x8xf32>
    %41 = tpu.matmul %38, %39, %cst_22 {dimension_numbers = #tpu.dot_dimension_numbers<[1], [1], [0], [0], [0, 0, 1, 0], [], []>} : vector<8x8xbf16>, vector<8x8xbf16>, vector<8x8xf32> -> vector<8x8xf32>
    "tpu.trace_stop"() : () -> ()
    %cst_23 = arith.constant dense<0xFF800000> : vector<8xf32>
    %42 = vector.multi_reduction <maximumf>, %41, %cst_23 [1] : vector<8x8xf32> to vector<8xf32>
    %43 = vector.shape_cast %42 : vector<8xf32> to vector<8x1xf32>
    %44 = vector.broadcast %43 : vector<8x1xf32> to vector<8x8xf32>
    %45 = arith.subf %41, %44 : vector<8x8xf32>
    %46 = math.exp %45 : vector<8x8xf32>
    %cst_24 = arith.constant dense<0.000000e+00> : vector<8xf32>
    %47 = vector.multi_reduction <add>, %46, %cst_24 [1] : vector<8x8xf32> to vector<8xf32>
    %48 = vector.shape_cast %47 : vector<8xf32> to vector<8x1xf32>
    %49 = tpu.reciprocal %48 {approx = true} : vector<8x1xf32> -> vector<8x1xf32>
    %50 = vector.broadcast %49 : vector<8x1xf32> to vector<8x8xf32>
    %51 = arith.mulf %46, %50 : vector<8x8xf32>
    %52 = arith.truncf %51 : vector<8x8xf32> to vector<8x8xbf16>
    %cst_25 = arith.constant dense<0.000000e+00> : vector<8x8xf32>
    %53 = tpu.matmul %52, %40, %cst_25 {dimension_numbers = #tpu.dot_dimension_numbers<[1], [0], [0], [1], [0, 0, 1, 1], [], []>} : vector<8x8xbf16>, vector<8x8xbf16>, vector<8x8xf32> -> vector<8x8xf32>
    %54 = arith.truncf %53 : vector<8x8xf32> to vector<8x8xbf16>
    %c8 = arith.constant 8 : index
    %c0_26 = arith.constant 0 : index
    %55 = vector.load %arg12[%c8, %c0_26] : memref<32x32xbf16, #tpu.memory_space<vmem>>, vector<8x32xbf16>
    %cst_27 = arith.constant dense<0.000000e+00> : vector<8x32xf32>
    %56 = tpu.matmul %54, %55, %cst_27 {dimension_numbers = #tpu.dot_dimension_numbers<[1], [0], [0], [1], [0, 0, 1, 1], [], []>} : vector<8x8xbf16>, vector<8x32xbf16>, vector<8x32xf32> -> vector<8x32xf32>
    %57 = arith.addf %37, %56 : vector<8x32xf32>
    %58 = vector.extract_strided_slice %14 {offsets = [0, 16], sizes = [8, 8], strides = [1, 1]} : vector<8x32xbf16> to vector<8x8xbf16>
    %59 = vector.extract_strided_slice %15 {offsets = [0, 16], sizes = [8, 8], strides = [1, 1]} : vector<8x32xbf16> to vector<8x8xbf16>
    %60 = vector.extract_strided_slice %16 {offsets = [0, 16], sizes = [8, 8], strides = [1, 1]} : vector<8x32xbf16> to vector<8x8xbf16>
    "tpu.trace_start"() <{level = 10 : i32, message = "qd,kd->qk"}> : () -> ()
    %cst_28 = arith.constant dense<0.000000e+00> : vector<8x8xf32>
    %61 = tpu.matmul %58, %59, %cst_28 {dimension_numbers = #tpu.dot_dimension_numbers<[1], [1], [0], [0], [0, 0, 1, 0], [], []>} : vector<8x8xbf16>, vector<8x8xbf16>, vector<8x8xf32> -> vector<8x8xf32>
    "tpu.trace_stop"() : () -> ()
    %cst_29 = arith.constant dense<0xFF800000> : vector<8xf32>
    %62 = vector.multi_reduction <maximumf>, %61, %cst_29 [1] : vector<8x8xf32> to vector<8xf32>
    %63 = vector.shape_cast %62 : vector<8xf32> to vector<8x1xf32>
    %64 = vector.broadcast %63 : vector<8x1xf32> to vector<8x8xf32>
    %65 = arith.subf %61, %64 : vector<8x8xf32>
    %66 = math.exp %65 : vector<8x8xf32>
    %cst_30 = arith.constant dense<0.000000e+00> : vector<8xf32>
    %67 = vector.multi_reduction <add>, %66, %cst_30 [1] : vector<8x8xf32> to vector<8xf32>
    %68 = vector.shape_cast %67 : vector<8xf32> to vector<8x1xf32>
    %69 = tpu.reciprocal %68 {approx = true} : vector<8x1xf32> -> vector<8x1xf32>
    %70 = vector.broadcast %69 : vector<8x1xf32> to vector<8x8xf32>
    %71 = arith.mulf %66, %70 : vector<8x8xf32>
    %72 = arith.truncf %71 : vector<8x8xf32> to vector<8x8xbf16>
    %cst_31 = arith.constant dense<0.000000e+00> : vector<8x8xf32>
    %73 = tpu.matmul %72, %60, %cst_31 {dimension_numbers = #tpu.dot_dimension_numbers<[1], [0], [0], [1], [0, 0, 1, 1], [], []>} : vector<8x8xbf16>, vector<8x8xbf16>, vector<8x8xf32> -> vector<8x8xf32>
    %74 = arith.truncf %73 : vector<8x8xf32> to vector<8x8xbf16>
    %c16 = arith.constant 16 : index
    %c0_32 = arith.constant 0 : index
    %75 = vector.load %arg12[%c16, %c0_32] : memref<32x32xbf16, #tpu.memory_space<vmem>>, vector<8x32xbf16>
    %cst_33 = arith.constant dense<0.000000e+00> : vector<8x32xf32>
    %76 = tpu.matmul %74, %75, %cst_33 {dimension_numbers = #tpu.dot_dimension_numbers<[1], [0], [0], [1], [0, 0, 1, 1], [], []>} : vector<8x8xbf16>, vector<8x32xbf16>, vector<8x32xf32> -> vector<8x32xf32>
    %77 = arith.addf %57, %76 : vector<8x32xf32>
    %78 = vector.extract_strided_slice %14 {offsets = [0, 24], sizes = [8, 8], strides = [1, 1]} : vector<8x32xbf16> to vector<8x8xbf16>
    %79 = vector.extract_strided_slice %15 {offsets = [0, 24], sizes = [8, 8], strides = [1, 1]} : vector<8x32xbf16> to vector<8x8xbf16>
    %80 = vector.extract_strided_slice %16 {offsets = [0, 24], sizes = [8, 8], strides = [1, 1]} : vector<8x32xbf16> to vector<8x8xbf16>
    "tpu.trace_start"() <{level = 10 : i32, message = "qd,kd->qk"}> : () -> ()
    %cst_34 = arith.constant dense<0.000000e+00> : vector<8x8xf32>
    %81 = tpu.matmul %78, %79, %cst_34 {dimension_numbers = #tpu.dot_dimension_numbers<[1], [1], [0], [0], [0, 0, 1, 0], [], []>} : vector<8x8xbf16>, vector<8x8xbf16>, vector<8x8xf32> -> vector<8x8xf32>
    "tpu.trace_stop"() : () -> ()
    %cst_35 = arith.constant dense<0xFF800000> : vector<8xf32>
    %82 = vector.multi_reduction <maximumf>, %81, %cst_35 [1] : vector<8x8xf32> to vector<8xf32>
    %83 = vector.shape_cast %82 : vector<8xf32> to vector<8x1xf32>
    %84 = vector.broadcast %83 : vector<8x1xf32> to vector<8x8xf32>
    %85 = arith.subf %81, %84 : vector<8x8xf32>
    %86 = math.exp %85 : vector<8x8xf32>
    %cst_36 = arith.constant dense<0.000000e+00> : vector<8xf32>
    %87 = vector.multi_reduction <add>, %86, %cst_36 [1] : vector<8x8xf32> to vector<8xf32>
    %88 = vector.shape_cast %87 : vector<8xf32> to vector<8x1xf32>
    %89 = tpu.reciprocal %88 {approx = true} : vector<8x1xf32> -> vector<8x1xf32>
    %90 = vector.broadcast %89 : vector<8x1xf32> to vector<8x8xf32>
    %91 = arith.mulf %86, %90 : vector<8x8xf32>
    %92 = arith.truncf %91 : vector<8x8xf32> to vector<8x8xbf16>
    %cst_37 = arith.constant dense<0.000000e+00> : vector<8x8xf32>
    %93 = tpu.matmul %92, %80, %cst_37 {dimension_numbers = #tpu.dot_dimension_numbers<[1], [0], [0], [1], [0, 0, 1, 1], [], []>} : vector<8x8xbf16>, vector<8x8xbf16>, vector<8x8xf32> -> vector<8x8xf32>
    %94 = arith.truncf %93 : vector<8x8xf32> to vector<8x8xbf16>
    %c24 = arith.constant 24 : index
    %c0_38 = arith.constant 0 : index
    %95 = vector.load %arg12[%c24, %c0_38] : memref<32x32xbf16, #tpu.memory_space<vmem>>, vector<8x32xbf16>
    %cst_39 = arith.constant dense<0.000000e+00> : vector<8x32xf32>
    %96 = tpu.matmul %94, %95, %cst_39 {dimension_numbers = #tpu.dot_dimension_numbers<[1], [0], [0], [1], [0, 0, 1, 1], [], []>} : vector<8x8xbf16>, vector<8x32xbf16>, vector<8x32xf32> -> vector<8x32xf32>
    %97 = arith.addf %77, %96 : vector<8x32xf32>
    %c0_40 = arith.constant 0 : index
    %c0_41 = arith.constant 0 : index
    %98 = vector.load %arg13[%c0_40, %c0_41] : memref<1x32xf32, #tpu.memory_space<vmem>>, vector<1x32xf32>
    %99 = vector.broadcast %98 : vector<1x32xf32> to vector<8x32xf32>
    %100 = arith.addf %97, %99 : vector<8x32xf32>
    %101 = arith.addf %4, %100 : vector<8x32xf32>
    %c0_42 = arith.constant 0 : index
    %c0_43 = arith.constant 0 : index
    %102 = vector.load %arg14[%c0_42, %c0_43] : memref<1x32xf32, #tpu.memory_space<vmem>>, vector<1x32xf32>
    %c0_44 = arith.constant 0 : index
    %c0_45 = arith.constant 0 : index
    %103 = vector.load %arg15[%c0_44, %c0_45] : memref<1x32xf32, #tpu.memory_space<vmem>>, vector<1x32xf32>
    %cst_46 = arith.constant dense<0.000000e+00> : vector<8xf32>
    %104 = vector.multi_reduction <add>, %101, %cst_46 [1] : vector<8x32xf32> to vector<8xf32>
    %105 = vector.shape_cast %104 : vector<8xf32> to vector<8x1xf32>
    %cst_47 = arith.constant 3.200000e+01 : f32
    %106 = vector.broadcast %cst_47 : f32 to vector<8x1xf32>
    %107 = arith.divf %105, %106 : vector<8x1xf32>
    %108 = vector.broadcast %107 : vector<8x1xf32> to vector<8x32xf32>
    %109 = arith.subf %101, %108 : vector<8x32xf32>
    %110 = arith.mulf %109, %109 : vector<8x32xf32>
    %cst_48 = arith.constant dense<0.000000e+00> : vector<8xf32>
    %111 = vector.multi_reduction <add>, %110, %cst_48 [1] : vector<8x32xf32> to vector<8xf32>
    %112 = vector.shape_cast %111 : vector<8xf32> to vector<8x1xf32>
    %cst_49 = arith.constant 3.200000e+01 : f32
    %113 = vector.broadcast %cst_49 : f32 to vector<8x1xf32>
    %114 = arith.divf %112, %113 : vector<8x1xf32>
    %115 = vector.broadcast %107 : vector<8x1xf32> to vector<8x32xf32>
    %116 = arith.subf %101, %115 : vector<8x32xf32>
    %cst_50 = arith.constant 9.99999974E-6 : f32
    %117 = vector.broadcast %cst_50 : f32 to vector<8x1xf32>
    %118 = arith.addf %114, %117 : vector<8x1xf32>
    %119 = math.rsqrt %118 : vector<8x1xf32>
    %120 = vector.broadcast %119 : vector<8x1xf32> to vector<8x32xf32>
    %121 = arith.mulf %116, %120 : vector<8x32xf32>
    %122 = vector.broadcast %102 : vector<1x32xf32> to vector<8x32xf32>
    %123 = arith.mulf %121, %122 : vector<8x32xf32>
    %124 = vector.broadcast %103 : vector<1x32xf32> to vector<8x32xf32>
    %125 = arith.addf %123, %124 : vector<8x32xf32>
    %126 = arith.truncf %125 : vector<8x32xf32> to vector<8x32xbf16>
    %c0_51 = arith.constant 0 : index
    %c0_52 = arith.constant 0 : index
    %127 = vector.load %arg16[%c0_51, %c0_52] : memref<32x64xbf16, #tpu.memory_space<vmem>>, vector<32x64xbf16>
    %cst_53 = arith.constant dense<0.000000e+00> : vector<8x64xf32>
    %128 = tpu.matmul %126, %127, %cst_53 {dimension_numbers = #tpu.dot_dimension_numbers<[1], [0], [0], [1], [0, 0, 1, 1], [], []>} : vector<8x32xbf16>, vector<32x64xbf16>, vector<8x64xf32> -> vector<8x64xf32>
    %c0_54 = arith.constant 0 : index
    %c0_55 = arith.constant 0 : index
    %129 = vector.load %arg17[%c0_54, %c0_55] : memref<1x64xf32, #tpu.memory_space<vmem>>, vector<1x64xf32>
    %130 = vector.broadcast %129 : vector<1x64xf32> to vector<8x64xf32>
    %131 = arith.addf %128, %130 : vector<8x64xf32>
    %cst_56 = arith.constant 0.000000e+00 : f32
    %132 = vector.broadcast %cst_56 : f32 to vector<8x64xf32>
    %133 = arith.maximumf %131, %132 : vector<8x64xf32>
    %134 = arith.truncf %133 : vector<8x64xf32> to vector<8x64xbf16>
    %c0_57 = arith.constant 0 : index
    %c0_58 = arith.constant 0 : index
    %135 = vector.load %arg18[%c0_57, %c0_58] : memref<64x32xbf16, #tpu.memory_space<vmem>>, vector<64x32xbf16>
    %cst_59 = arith.constant dense<0.000000e+00> : vector<8x32xf32>
    %136 = tpu.matmul %134, %135, %cst_59 {dimension_numbers = #tpu.dot_dimension_numbers<[1], [0], [0], [1], [0, 0, 1, 1], [], []>} : vector<8x64xbf16>, vector<64x32xbf16>, vector<8x32xf32> -> vector<8x32xf32>
    %c0_60 = arith.constant 0 : index
    %c0_61 = arith.constant 0 : index
    %137 = vector.load %arg19[%c0_60, %c0_61] : memref<1x32xf32, #tpu.memory_space<vmem>>, vector<1x32xf32>
    %138 = vector.broadcast %137 : vector<1x32xf32> to vector<8x32xf32>
    %139 = arith.addf %136, %138 : vector<8x32xf32>
    %140 = arith.addf %125, %139 : vector<8x32xf32>
    %c0_62 = arith.constant 0 : index
    %c0_63 = arith.constant 0 : index
    %141 = vector.load %arg20[%c0_62, %c0_63] : memref<1x32xf32, #tpu.memory_space<vmem>>, vector<1x32xf32>
    %c0_64 = arith.constant 0 : index
    %c0_65 = arith.constant 0 : index
    %142 = vector.load %arg21[%c0_64, %c0_65] : memref<1x32xf32, #tpu.memory_space<vmem>>, vector<1x32xf32>
    %cst_66 = arith.constant dense<0.000000e+00> : vector<8xf32>
    %143 = vector.multi_reduction <add>, %140, %cst_66 [1] : vector<8x32xf32> to vector<8xf32>
    %144 = vector.shape_cast %143 : vector<8xf32> to vector<8x1xf32>
    %cst_67 = arith.constant 3.200000e+01 : f32
    %145 = vector.broadcast %cst_67 : f32 to vector<8x1xf32>
    %146 = arith.divf %144, %145 : vector<8x1xf32>
    %147 = vector.broadcast %146 : vector<8x1xf32> to vector<8x32xf32>
    %148 = arith.subf %140, %147 : vector<8x32xf32>
    %149 = arith.mulf %148, %148 : vector<8x32xf32>
    %cst_68 = arith.constant dense<0.000000e+00> : vector<8xf32>
    %150 = vector.multi_reduction <add>, %149, %cst_68 [1] : vector<8x32xf32> to vector<8xf32>
    %151 = vector.shape_cast %150 : vector<8xf32> to vector<8x1xf32>
    %cst_69 = arith.constant 3.200000e+01 : f32
    %152 = vector.broadcast %cst_69 : f32 to vector<8x1xf32>
    %153 = arith.divf %151, %152 : vector<8x1xf32>
    %154 = vector.broadcast %146 : vector<8x1xf32> to vector<8x32xf32>
    %155 = arith.subf %140, %154 : vector<8x32xf32>
    %cst_70 = arith.constant 9.99999974E-6 : f32
    %156 = vector.broadcast %cst_70 : f32 to vector<8x1xf32>
    %157 = arith.addf %153, %156 : vector<8x1xf32>
    %158 = math.rsqrt %157 : vector<8x1xf32>
    %159 = vector.broadcast %158 : vector<8x1xf32> to vector<8x32xf32>
    %160 = arith.mulf %155, %159 : vector<8x32xf32>
    %161 = vector.broadcast %141 : vector<1x32xf32> to vector<8x32xf32>
    %162 = arith.mulf %160, %161 : vector<8x32xf32>
    %163 = vector.broadcast %142 : vector<1x32xf32> to vector<8x32xf32>
    %164 = arith.addf %162, %163 : vector<8x32xf32>
    %c0_71 = arith.constant 0 : index
    %c0_72 = arith.constant 0 : index
    %c0_73 = arith.constant 0 : index
    %165 = vector.load %arg22[%c0_71, %c0_72, %c0_73] : memref<1x8x32xf32, #tpu.memory_space<vmem>>, vector<1x8x32xf32>
    %166 = vector.shape_cast %165 : vector<1x8x32xf32> to vector<8x32xf32>
    %167 = vector.shape_cast %164 : vector<8x32xf32> to vector<1x8x32xf32>
    tpu.vector_store %arg22[%c0_71, %c0_72, %c0_73], %167 {strides = array<i32>} : memref<1x8x32xf32, #tpu.memory_space<vmem>>, vector<1x8x32xf32>,
    return
  }
  func.func @transform_0(%arg0: i32, %arg1: i32) -> (i32, i32, i32) {
    %c0_i32 = arith.constant 0 : i32
    %c0_i32_0 = arith.constant 0 : i32
    return %arg0, %arg1, %c0_i32 : i32, i32, i32
  }
  func.func @transform_1(%arg0: i32, %arg1: i32) -> (i32, i32, i32) {
    %c0_i32 = arith.constant 0 : i32
    %c0_i32_0 = arith.constant 0 : i32
    %c0_i32_1 = arith.constant 0 : i32
    return %arg0, %c0_i32, %c0_i32_0 : i32, i32, i32
  }
  func.func @transform_2(%arg0: i32, %arg1: i32) -> (i32, i32, i32) {
    %c0_i32 = arith.constant 0 : i32
    %c0_i32_0 = arith.constant 0 : i32
    return %arg0, %arg1, %c0_i32 : i32, i32, i32
  }
  func.func @transform_3(%arg0: i32, %arg1: i32) -> (i32, i32, i32) {
    %c0_i32 = arith.constant 0 : i32
    %c0_i32_0 = arith.constant 0 : i32
    %c0_i32_1 = arith.constant 0 : i32
    return %arg0, %c0_i32, %c0_i32_0 : i32, i32, i32
  }
  func.func @transform_4(%arg0: i32, %arg1: i32) -> (i32, i32) {
    %c0_i32 = arith.constant 0 : i32
    %c0_i32_0 = arith.constant 0 : i32
    %c0_i32_1 = arith.constant 0 : i32
    return %c0_i32, %c0_i32_0 : i32, i32
  }
  func.func @transform_5(%arg0: i32, %arg1: i32) -> (i32, i32) {
    %c0_i32 = arith.constant 0 : i32
    %c0_i32_0 = arith.constant 0 : i32
    %c0_i32_1 = arith.constant 0 : i32
    return %c0_i32, %c0_i32_0 : i32, i32
  }
  func.func @transform_6(%arg0: i32, %arg1: i32) -> (i32, i32) {
    %c0_i32 = arith.constant 0 : i32
    %c0_i32_0 = arith.constant 0 : i32
    %c0_i32_1 = arith.constant 0 : i32
    return %c0_i32, %c0_i32_0 : i32, i32
  }
  func.func @transform_7(%arg0: i32, %arg1: i32) -> (i32, i32) {
    %c0_i32 = arith.constant 0 : i32
    %c0_i32_0 = arith.constant 0 : i32
    %c0_i32_1 = arith.constant 0 : i32
    return %c0_i32, %c0_i32_0 : i32, i32
  }
  func.func @transform_8(%arg0: i32, %arg1: i32) -> (i32, i32) {
    %c0_i32 = arith.constant 0 : i32
    %c0_i32_0 = arith.constant 0 : i32
    %c0_i32_1 = arith.constant 0 : i32
    return %c0_i32, %c0_i32_0 : i32, i32
  }
  func.func @transform_9(%arg0: i32, %arg1: i32) -> (i32, i32) {
    %c0_i32 = arith.constant 0 : i32
    %c0_i32_0 = arith.constant 0 : i32
    %c0_i32_1 = arith.constant 0 : i32
    return %c0_i32, %c0_i32_0 : i32, i32
  }
  func.func @transform_10(%arg0: i32, %arg1: i32) -> (i32, i32) {
    %c0_i32 = arith.constant 0 : i32
    %c0_i32_0 = arith.constant 0 : i32
    %c0_i32_1 = arith.constant 0 : i32
    return %c0_i32, %c0_i32_0 : i32, i32
  }
  func.func @transform_11(%arg0: i32, %arg1: i32) -> (i32, i32) {
    %c0_i32 = arith.constant 0 : i32
    %c0_i32_0 = arith.constant 0 : i32
    %c0_i32_1 = arith.constant 0 : i32
    return %c0_i32, %c0_i32_0 : i32, i32
  }
  func.func @transform_12(%arg0: i32, %arg1: i32) -> (i32, i32) {
    %c0_i32 = arith.constant 0 : i32
    %c0_i32_0 = arith.constant 0 : i32
    %c0_i32_1 = arith.constant 0 : i32
    return %c0_i32, %c0_i32_0 : i32, i32
  }
  func.func @transform_13(%arg0: i32, %arg1: i32) -> (i32, i32) {
    %c0_i32 = arith.constant 0 : i32
    %c0_i32_0 = arith.constant 0 : i32
    %c0_i32_1 = arith.constant 0 : i32
    return %c0_i32, %c0_i32_0 : i32, i32
  }
  func.func @transform_14(%arg0: i32, %arg1: i32) -> (i32, i32) {
    %c0_i32 = arith.constant 0 : i32
    %c0_i32_0 = arith.constant 0 : i32
    %c0_i32_1 = arith.constant 0 : i32
    return %c0_i32, %c0_i32_0 : i32, i32
  }
  func.func @transform_15(%arg0: i32, %arg1: i32) -> (i32, i32) {
    %c0_i32 = arith.constant 0 : i32
    %c0_i32_0 = arith.constant 0 : i32
    %c0_i32_1 = arith.constant 0 : i32
    return %c0_i32, %c0_i32_0 : i32, i32
  }
  func.func @transform_16(%arg0: i32, %arg1: i32) -> (i32, i32) {
    %c0_i32 = arith.constant 0 : i32
    %c0_i32_0 = arith.constant 0 : i32
    %c0_i32_1 = arith.constant 0 : i32
    return %c0_i32, %c0_i32_0 : i32, i32
  }
  func.func @transform_17(%arg0: i32, %arg1: i32) -> (i32, i32) {
    %c0_i32 = arith.constant 0 : i32
    %c0_i32_0 = arith.constant 0 : i32
    %c0_i32_1 = arith.constant 0 : i32
    return %c0_i32, %c0_i32_0 : i32, i32
  }
  func.func @transform_18(%arg0: i32, %arg1: i32) -> (i32, i32) {
    %c0_i32 = arith.constant 0 : i32
    %c0_i32_0 = arith.constant 0 : i32
    %c0_i32_1 = arith.constant 0 : i32
    return %c0_i32, %c0_i32_0 : i32, i32
  }
  func.func @transform_19(%arg0: i32, %arg1: i32) -> (i32, i32) {
    %c0_i32 = arith.constant 0 : i32
    %c0_i32_0 = arith.constant 0 : i32
    %c0_i32_1 = arith.constant 0 : i32
    return %c0_i32, %c0_i32_0 : i32, i32
  }
  func.func @transform_20(%arg0: i32, %arg1: i32) -> (i32, i32, i32) {
    %c0_i32 = arith.constant 0 : i32
    %c0_i32_0 = arith.constant 0 : i32
    return %arg0, %arg1, %c0_i32 : i32, i32, i32
  }
}

</mosaic_0001>

<bundles_post_ra>
// kernel: transformer_encoder_layer.1
= control target key start
LH: loop header
LB: loop body
LE: loop exit
PB: predicated region body
PF: predicated region fallthrough
CT: control target
= control target key end

     0   :  { %s4571_s0 = inlined_call_operand.hbm [shape: f32[2,8,32], index: 0, kind: input, shape index: {}, may-alias: {0,1}]   ;;  %s4572_s1 = inlined_call_operand.hbm [shape: f32[2,8,32], index: 1, kind: input, shape index: {}, may-alias: {0,1}]   ;;  %s4573_s2 = inlined_call_operand.hbm [shape: f32[2,8,32], index: 2, kind: input, shape index: {}, may-alias: {2,3}]   ;;  %s4574_s3 = inlined_call_operand.hbm [shape: f32[2,8,32], index: 3, kind: input, shape index: {}, may-alias: {2,3}]   ;;  %s4575_s4 = inlined_call_operand.hbm [shape: bf16[32,32], index: 4, kind: input, shape index: {}]   ;;  %s4576_s5 = inlined_call_operand.hbm [shape: f32[1,32], index: 5, kind: input, shape index: {}]   ;;  %s4577_s6 = inlined_call_operand.hbm [shape: bf16[32,32], index: 6, kind: input, shape index: {}]   ;;  %s4578_s7 = inlined_call_operand.hbm [shape: f32[1,32], index: 7, kind: input, shape index: {}]   ;;  %s4579_s8 = inlined_call_operand.hbm [shape: bf16[32,32], index: 8, kind: input, shape index: {}]   ;;  %s4580_s9 = inlined_call_operand.hbm [shape: f32[1,32], index: 9, kind: input, shape index: {}]   ;;  %s4581_s10 = inlined_call_operand.hbm [shape: bf16[32,32], index: 10, kind: input, shape index: {}]   ;;  %s4582_s11 = inlined_call_operand.hbm [shape: f32[1,32], index: 11, kind: input, shape index: {}]   ;;  %s4583_s12 = inlined_call_operand.hbm [shape: f32[1,32], index: 12, kind: input, shape index: {}]   ;;  %s4584_s13 = inlined_call_operand.hbm [shape: f32[1,32], index: 13, kind: input, shape index: {}]   ;;  %s4585_s14 = inlined_call_operand.hbm [shape: bf16[32,64], index: 14, kind: input, shape index: {}]   ;;  %s4586_s15 = inlined_call_operand.hbm [shape: f32[1,64], index: 15, kind: input, shape index: {}]   ;;  %s4587_s16 = inlined_call_operand.hbm [shape: bf16[64,32], index: 16, kind: input, shape index: {}]   ;;  %s4588_s17 = inlined_call_operand.hbm [shape: f32[1,32], index: 17, kind: input, shape index: {}]   ;;  %s4589_s18 = inlined_call_operand.hbm [shape: f32[1,32], index: 18, kind: input, shape index: {}]   ;;  %s4590_s19 = inlined_call_operand.hbm [shape: f32[1,32], index: 19, kind: input, shape index: {}]   ;;  %s4591_s20 = inlined_call_operand.hbm [shape: f32[2,8,32], index: 20, kind: output, shape index: {}]  }
   0x1   :  { %4632 = sst [smem:[#allocation55_spill]] %s4571_s0 }
   0x2   :  { %4633 = sst [smem:[#allocation56_spill]] %s4572_s1 }
   0x3   :  { %4634 = sst [smem:[#allocation57_spill]] %s4573_s2 }
   0x4   :  { %4635 = sst [smem:[#allocation58_spill]] %s4574_s3 }
   0x5   :  { %4636 = sst [smem:[#allocation59_spill]] %s4575_s4 }
   0x6   :  { %4637 = sst [smem:[#allocation60_spill]] %s4576_s5 }
   0x7   :  { %4638 = sst [smem:[#allocation61_spill]] %s4577_s6 }
   0x8   :  { %4639 = sst [smem:[#allocation62_spill]] %s4578_s7 }
   0x9   :  { %4640 = sst [smem:[#allocation63_spill]] %s4579_s8 }
   0xa   :  { %4641 = sst [smem:[#allocation64_spill]] %s4580_s9 }
   0xb   :  { %4642 = sst [smem:[#allocation65_spill]] %s4581_s10 }
   0xc   :  { %4643 = sst [smem:[#allocation66_spill]] %s4582_s11 }
   0xd   :  { %4644 = sst [smem:[#allocation67_spill]] %s4583_s12 }
   0xe   :  { %4645 = sst [smem:[#allocation68_spill]] %s4584_s13 }
   0xf   :  { %4646 = sst [smem:[#allocation69_spill]] %s4585_s14 }
  0x10   :  { %4647 = sst [smem:[#allocation70_spill]] %s4586_s15 }
  0x11   :  { %4648 = sst [smem:[#allocation71_spill]] %s4587_s16 }
  0x12   :  { %4649 = sst [smem:[#allocation72_spill]] %s4588_s17 }
  0x13   :  { %4650 = sst [smem:[#allocation73_spill]] %s4589_s18 }
  0x14   :  { %4651 = sst [smem:[#allocation74_spill]] %s4590_s19 }
  0x15   :  { %4652 = sst [smem:[#allocation75_spill]] %s4591_s20 }
  0x16   :  { %25 = vsyncpa [#allocation5], 0 }
  0x17   :  { %27 = vsyncpa [#allocation5 + $0x1], 0 }
  0x18   :  { %28 = vsyncpa [#allocation8], 0 }
  0x19   :  { %30 = vsyncpa [#allocation8 + $0x1], 0 }
  0x1a   :  { %31 = vsyncpa [#allocation11], 0 }
  0x1b   :  { %33 = vsyncpa [#allocation11 + $0x1], 0 }
  0x1c   :  { %34 = vsyncpa [#allocation14], 0 }
  0x1d   :  { %35 = vsyncpa [#allocation17], 0 }
  0x1e   :  { %36 = vsyncpa [#allocation20], 0 }
  0x1f   :  { %37 = vsyncpa [#allocation23], 0 }
  0x20   :  { %38 = vsyncpa [#allocation26], 0 }
  0x21   :  { %39 = vsyncpa [#allocation29], 0 }
  0x22   :  { %40 = vsyncpa [#allocation32], 0 }
  0x23   :  { %41 = vsyncpa [#allocation35], 0 }
  0x24   :  { %42 = vsyncpa [#allocation6], 0 }
  0x25   :  { %44 = vsyncpa [#allocation6 + $0x1], 0  ;;  %s3740_s1 = smov 0   ;;  %s3742_s22 = smov 0  }
  0x26   :  { %s3744_s23 = smov 0   ;;  %s3746_s24 = smov 0  }
  0x27   :  { %s3748_s2 = smov 0   ;;  %s3750_s25 = smov 0  }
  0x28 LB: > { %4653 = sst [smem:[#allocation50_spill]] %s3597_s24  ;;  %s3771_s3 = sadd.s32 4294967295, %s3605_s25   ;;  %s3605_s25 = sphi %s3750_s25, %s50_s25   ;;  %s3601_s2 = sphi %s3748_s2, %s4727_s2   ;;  %s3597_s24 = sphi %s3746_s24, %s4726_s24   ;;  %s3593_s23 = sphi %s3744_s23, %s4730_s23   ;;  %s3589_s22 = sphi %s3742_s22, %s4729_s22   ;;  %s3585_s1 = sphi %s3740_s1, %s4728_s1  }
  0x29   : > { %4654 = sst [smem:[#allocation51_spill]] %s3601_s2  ;;  %p2382_p0 = scmp.ge.s32.totalorder %s3605_s25, 1 }
  0x2a   : > { %p4606_p1 = scmp.eq.s32.totalorder %s3771_s3, 0  ;;  %p539_p2 = scmp.lt.s32.totalorder %s3605_s25, 3 }
  0x2b   : > { %s3607_s27 = smov [#allocation12]   ;;  %s3608_s29 = smov [#allocation13]  }
  0x2c   : > { %p3776_p3 = pnand %p2382_p0, %p539_p2  ;;  %s551_s28 = sshll.u32 %s3607_s27, 4  ;;  %s3780_s28 = int_to_ptr.vmem [resolvable:$true] %s551_s28 }
  0x2d   : > { %s565_s30 = sshll.u32 %s3608_s29, 4  ;;  %s3609_s0 = smov [#allocation16]   ;;  %s3791_s30 = int_to_ptr.vmem [resolvable:$true] %s565_s30 }
  0x2e   : > { %s4655_s26 = scalar_select %p3776_p3, 1, 0 }
  0x2f   : > { %p2706_p4 = pneg %p3776_p3  ;;  %s3793_s21 = sshll.u32 %s3609_s0, 4  ;;  %s590_s21 = int_to_ptr.vmem [resolvable:$true] %s3793_s21 }
  0x30   : > { %4656 = sst [smem:[#allocation52_spill]] %s4655_s26  ;;  %s4658_s24 = sld [smem:[#allocation59_spill]] }
  0x31   : > { %p3787_p6 = pnand %p2706_p4, %p4606_p1 }
  0x33   : > { %s4657_s4 = scalar_select %p3787_p6, 1, 0 }
  0x34   : > { %p3803_p8 = pneg %p3787_p6 }
  0x36   : > { %s4659_s19 = smov %s4658_s24  ;;  %s2911_s18 = scalar_lea.hbm %s4658_s24, 256 }
  0x37   : > { %p2912_p7 = scmp.ne.s32.totalorder %s4659_s19, %s2911_s18  ;;  %p2918_p11 = scmp.lt.u32.totalorder %s2911_s18, %s4659_s19 }
  0x38   : > { %s4660_s14 = scalar_select %p3803_p8, 1, 0 }
  0x39   : > { %p2914_p9 = pnand %p3803_p8, %p2912_p7 }
  0x3b   : > { %p2915_p10 = pneg %p2914_p9 }
  0x3d   : > { %p2920_p12 = pnand %p2918_p11, %p2915_p10 }
  0x3f   : > { %2923 = shalt.err (!%p2920_p12)
}
  0x40   : > { %s2924_s16 = scalar_lea.vmem %s3780_s28, 256  ;;  %p2932_p4 = scmp.lt.s32.totalorder %s3780_s28, %s3780_s28 }
  0x41   : > { %p2925_p13 = scmp.ne.s32.totalorder %s3780_s28, %s2924_s16  ;;  %p2933_p5 = scmp.lt.s32.totalorder %s2924_s16, %s2924_s16 }
  0x43   : > { %p2927_p0 = pnand %p2925_p13, %p3803_p8  ;;  %p2934_p7 = por %p2933_p5, %p2932_p4 }
  0x45   : > { %p2928_p2 = pneg %p2927_p0 }
  0x47   : > { %p2935_p9 = pnand %p2934_p7, %p2928_p2 }
  0x49   : > { %2938 = shalt.err (!%p2935_p9)
}
  0x4a   : > { %s4608_s20 = smov 64   ;;  %s4610_s18 = smov 4  }
  0x4b   : > { %2709 = dma.hbm_to_vmem [thread:$0]  (!%p3787_p6), %s4659_s19, 256, %s3780_s28, [#allocation11], %s4608_s20, %s4608_s20, %s4610_s18  }
  0x4c   : > { %s4661_s5 = sld [smem:[#allocation60_spill]] }
  0x52   : > { %s2939_s0 = scalar_lea.hbm %s4661_s5, 16 }
  0x53   : > { %p2940_p5 = scmp.ne.s32.totalorder %s4661_s5, %s2939_s0  ;;  %p2946_p12 = scmp.lt.u32.totalorder %s2939_s0, %s4661_s5 }
  0x55   : > { %p2942_p10 = pnand %p2940_p5, %p3803_p8 }
  0x57   : > { %p2943_p11 = pneg %p2942_p10 }
  0x59   : > { %p2948_p13 = pnand %p2946_p12, %p2943_p11 }
  0x5b   : > { %2951 = shalt.err (!%p2948_p13)
}
  0x5c   : > { %s2952_s28 = scalar_lea.vmem %s3791_s30, 16  ;;  %s2959_s12 = scalar_lea.vmem %s3791_s30, 32 }
  0x5d   : > { %p2953_p0 = scmp.ne.s32.totalorder %s3791_s30, %s2952_s28  ;;  %p2960_p7 = scmp.lt.s32.totalorder %s3791_s30, %s3791_s30 }
  0x5e   : > { %p2961_p9 = scmp.lt.s32.totalorder %s2959_s12, %s2952_s28 }
  0x5f   : > { %p2955_p2 = pnand %p2953_p0, %p3803_p8 }
  0x60   : > { %p2962_p5 = por %p2961_p9, %p2960_p7 }
  0x61   : > { %p2956_p4 = pneg %p2955_p2 }
  0x63   : > { %p2963_p10 = pnand %p2962_p5, %p2956_p4 }
  0x65   : > { %2966 = shalt.err (!%p2963_p10)
}
  0x66   : > { %2712 = dma.hbm_to_vmem [thread:$0]  (!%p3787_p6), %s4661_s5, 16, %s3791_s30, [#allocation14]  }
  0x67   : > { %s4662_s7 = sld [smem:[#allocation62_spill]] }
  0x6d   : > { %s2967_s27 = scalar_lea.hbm %s4662_s7, 16 }
  0x6e   : > { %p2968_p11 = scmp.ne.s32.totalorder %s4662_s7, %s2967_s27  ;;  %p2974_p0 = scmp.lt.u32.totalorder %s2967_s27, %s4662_s7 }
  0x70   : > { %p2970_p12 = pnand %p2968_p11, %p3803_p8 }
  0x72   : > { %p2971_p13 = pneg %p2970_p12 }
  0x74   : > { %p2976_p2 = pnand %p2974_p0, %p2971_p13 }
  0x76   : > { %2979 = shalt.err (!%p2976_p2)
}
  0x77   : > { %s2980_s12 = scalar_lea.vmem %s590_s21, 16  ;;  %s2987_s30 = scalar_lea.vmem %s590_s21, 32 }
  0x78   : > { %p2981_p4 = scmp.ne.s32.totalorder %s590_s21, %s2980_s12  ;;  %p2988_p5 = scmp.lt.s32.totalorder %s590_s21, %s590_s21 }
  0x79   : > { %p2989_p10 = scmp.lt.s32.totalorder %s2987_s30, %s2980_s12 }
  0x7a   : > { %p2983_p7 = pnand %p2981_p4, %p3803_p8 }
  0x7b   : > { %p2990_p1 = por %p2989_p10, %p2988_p5 }
  0x7c   : > { %p2984_p9 = pneg %p2983_p7 }
  0x7e   : > { %p2991_p3 = pnand %p2990_p1, %p2984_p9 }
  0x80   : > { %2994 = shalt.err (!%p2991_p3)
}
  0x81   : > { %2718 = dma.hbm_to_vmem [thread:$0]  (!%p3787_p6), %s4662_s7, 16, %s590_s21, [#allocation17]  }
  0x82   : > { %s3612_s24 = smov [#allocation19]   ;;  %s3613_s27 = smov [#allocation22]  }
  0x83   : > { %s613_s26 = sshll.u32 %s3612_s24, 4  ;;  %s637_s29 = sshll.u32 %s3613_s27, 4  ;;  %s614_s26 = int_to_ptr.vmem [resolvable:$true] %s613_s26  ;;  %s638_s29 = int_to_ptr.vmem [resolvable:$true] %s637_s29 }
  0x84   : > { %s4663_s9 = sld [smem:[#allocation64_spill]] }
  0x8a   : > { %s2995_s28 = scalar_lea.hbm %s4663_s9, 16 }
  0x8b   : > { %p2996_p1 = scmp.ne.s32.totalorder %s4663_s9, %s2995_s28  ;;  %p3002_p12 = scmp.lt.u32.totalorder %s2995_s28, %s4663_s9 }
  0x8d   : > { %p2998_p3 = pnand %p2996_p1, %p3803_p8 }
  0x8f   : > { %p2999_p11 = pneg %p2998_p3 }
  0x91   : > { %p3004_p13 = pnand %p3002_p12, %p2999_p11 }
  0x93   : > { %3007 = shalt.err (!%p3004_p13)
}
  0x94   : > { %s3008_s21 = scalar_lea.vmem %s614_s26, 16  ;;  %s3015_s10 = scalar_lea.vmem %s614_s26, 32 }
  0x95   : > { %p3009_p0 = scmp.ne.s32.totalorder %s614_s26, %s3008_s21  ;;  %p3016_p7 = scmp.lt.s32.totalorder %s614_s26, %s614_s26 }
  0x96   : > { %p3017_p9 = scmp.lt.s32.totalorder %s3015_s10, %s3008_s21 }
  0x97   : > { %p3011_p2 = pnand %p3009_p0, %p3803_p8 }
  0x98   : > { %p3018_p5 = por %p3017_p9, %p3016_p7 }
  0x99   : > { %p3012_p4 = pneg %p3011_p2 }
  0x9b   : > { %p3019_p10 = pnand %p3018_p5, %p3012_p4 }
  0x9d   : > { %3022 = shalt.err (!%p3019_p10)
}
  0x9e   : > { %2724 = dma.hbm_to_vmem [thread:$0]  (!%p3787_p6), %s4663_s9, 16, %s614_s26, [#allocation20]  }
  0x9f   : > { %s4664_s11 = sld [smem:[#allocation66_spill]] }
  0xa5   : > { %s3023_s16 = scalar_lea.hbm %s4664_s11, 16 }
  0xa6   : > { %p3024_p1 = scmp.ne.s32.totalorder %s4664_s11, %s3023_s16  ;;  %p3030_p12 = scmp.lt.u32.totalorder %s3023_s16, %s4664_s11 }
  0xa8   : > { %p3026_p3 = pnand %p3024_p1, %p3803_p8 }
  0xaa   : > { %p3027_p11 = pneg %p3026_p3 }
  0xac   : > { %p3032_p13 = pnand %p3030_p12, %p3027_p11 }
  0xae   : > { %3035 = shalt.err (!%p3032_p13)
}
  0xaf   : > { %s3036_s21 = scalar_lea.vmem %s638_s29, 16  ;;  %s3043_s26 = scalar_lea.vmem %s638_s29, 32 }
  0xb0   : > { %p3037_p0 = scmp.ne.s32.totalorder %s638_s29, %s3036_s21  ;;  %p3044_p7 = scmp.lt.s32.totalorder %s638_s29, %s638_s29 }
  0xb1   : > { %p3045_p9 = scmp.lt.s32.totalorder %s3043_s26, %s3036_s21 }
  0xb2   : > { %p3039_p2 = pnand %p3037_p0, %p3803_p8 }
  0xb3   : > { %p3046_p5 = por %p3045_p9, %p3044_p7 }
  0xb4   : > { %p3040_p4 = pneg %p3039_p2 }
  0xb6   : > { %p3047_p10 = pnand %p3046_p5, %p3040_p4 }
  0xb8   : > { %3050 = shalt.err (!%p3047_p10)
}
  0xb9   : > { %2730 = dma.hbm_to_vmem [thread:$0]  (!%p3787_p6), %s4664_s11, 16, %s638_s29, [#allocation23]  }
  0xba   : > { %s3614_s27 = smov [#allocation25]   ;;  %s3615_s0 = smov [#allocation28]  }
  0xbb   : > { %s659_s20 = sshll.u32 %s3614_s27, 4  ;;  %s683_s16 = sshll.u32 %s3615_s0, 4  ;;  %s660_s20 = int_to_ptr.vmem [resolvable:$true] %s659_s20  ;;  %s684_s16 = int_to_ptr.vmem [resolvable:$true] %s683_s16 }
  0xbc   : > { %s4665_s13 = sld [smem:[#allocation68_spill]] }
  0xc2   : > { %s3051_s30 = scalar_lea.hbm %s4665_s13, 16 }
  0xc3   : > { %p3052_p1 = scmp.ne.s32.totalorder %s4665_s13, %s3051_s30  ;;  %p3058_p12 = scmp.lt.u32.totalorder %s3051_s30, %s4665_s13 }
  0xc5   : > { %p3054_p3 = pnand %p3052_p1, %p3803_p8 }
  0xc7   : > { %p3055_p11 = pneg %p3054_p3 }
  0xc9   : > { %p3060_p13 = pnand %p3058_p12, %p3055_p11 }
  0xcb   : > { %3063 = shalt.err (!%p3060_p13)
}
  0xcc   : > { %s3064_s29 = scalar_lea.vmem %s660_s20, 16  ;;  %s3071_s24 = scalar_lea.vmem %s660_s20, 32 }
  0xcd   : > { %p3065_p0 = scmp.ne.s32.totalorder %s660_s20, %s3064_s29  ;;  %p3072_p7 = scmp.lt.s32.totalorder %s660_s20, %s660_s20 }
  0xce   : > { %p3073_p9 = scmp.lt.s32.totalorder %s3071_s24, %s3064_s29 }
  0xcf   : > { %p3067_p2 = pnand %p3065_p0, %p3803_p8 }
  0xd0   : > { %p3074_p5 = por %p3073_p9, %p3072_p7 }
  0xd1   : > { %p3068_p4 = pneg %p3067_p2 }
  0xd3   : > { %p3075_p10 = pnand %p3074_p5, %p3068_p4 }
  0xd5   : > { %3078 = shalt.err (!%p3075_p10)
}
  0xd6   : > { %2736 = dma.hbm_to_vmem [thread:$0]  (!%p3787_p6), %s4665_s13, 16, %s660_s20, [#allocation26]  }
  0xd7   : > { %s4666_s15 = sld [smem:[#allocation70_spill]] }
  0xdd   : > { %s3079_s30 = scalar_lea.hbm %s4666_s15, 16 }
  0xde   : > { %p3080_p1 = scmp.ne.s32.totalorder %s4666_s15, %s3079_s30  ;;  %p3086_p12 = scmp.lt.u32.totalorder %s3079_s30, %s4666_s15 }
  0xe0   : > { %p3082_p3 = pnand %p3080_p1, %p3803_p8 }
  0xe2   : > { %p3083_p11 = pneg %p3082_p3 }
  0xe4   : > { %p3088_p13 = pnand %p3086_p12, %p3083_p11 }
  0xe6   : > { %3091 = shalt.err (!%p3088_p13)
}
  0xe7   : > { %s3092_s29 = scalar_lea.vmem %s684_s16, 16  ;;  %s3099_s20 = scalar_lea.vmem %s684_s16, 32 }
  0xe8   : > { %p3093_p0 = scmp.ne.s32.totalorder %s684_s16, %s3092_s29  ;;  %p3100_p7 = scmp.lt.s32.totalorder %s684_s16, %s684_s16 }
  0xe9   : > { %p3101_p9 = scmp.lt.s32.totalorder %s3099_s20, %s3092_s29 }
  0xea   : > { %p3095_p2 = pnand %p3093_p0, %p3803_p8 }
  0xeb   : > { %p3102_p5 = por %p3101_p9, %p3100_p7 }
  0xec   : > { %p3096_p4 = pneg %p3095_p2 }
  0xee   : > { %p3103_p10 = pnand %p3102_p5, %p3096_p4 }
  0xf0   : > { %3106 = shalt.err (!%p3103_p10)
}
  0xf1   : > { %2742 = dma.hbm_to_vmem [thread:$0]  (!%p3787_p6), %s4666_s15, 16, %s684_s16, [#allocation29]  }
  0xf2   : > { %s3616_s0 = smov [#allocation31]   ;;  %s4667_s17 = sld [smem:[#allocation72_spill]] }
  0xf3   : > { %s707_s28 = sshll.u32 %s3616_s0, 4  ;;  %s708_s28 = int_to_ptr.vmem [resolvable:$true] %s707_s28 }
  0xf8   : > { %s3107_s8 = scalar_lea.hbm %s4667_s17, 16 }
  0xf9   : > { %p3108_p1 = scmp.ne.s32.totalorder %s4667_s17, %s3107_s8  ;;  %p3114_p12 = scmp.lt.u32.totalorder %s3107_s8, %s4667_s17 }
  0xfb   : > { %p3110_p3 = pnand %p3108_p1, %p3803_p8 }
  0xfd   : > { %p3111_p11 = pneg %p3110_p3 }
  0xff   : > { %p3116_p13 = pnand %p3114_p12, %p3111_p11 }
 0x101   : > { %3119 = shalt.err (!%p3116_p13)
}
 0x102   : > { %s3120_s16 = scalar_lea.vmem %s708_s28, 16  ;;  %s3127_s20 = scalar_lea.vmem %s708_s28, 32 }
 0x103   : > { %p3121_p0 = scmp.ne.s32.totalorder %s708_s28, %s3120_s16  ;;  %p3128_p7 = scmp.lt.s32.totalorder %s708_s28, %s708_s28 }
 0x104   : > { %p3129_p9 = scmp.lt.s32.totalorder %s3127_s20, %s3120_s16 }
 0x105   : > { %p3123_p2 = pnand %p3121_p0, %p3803_p8 }
 0x106   : > { %p3130_p5 = por %p3129_p9, %p3128_p7 }
 0x107   : > { %p3124_p4 = pneg %p3123_p2 }
 0x109   : > { %p3131_p10 = pnand %p3130_p5, %p3124_p4 }
 0x10b   : > { %3134 = shalt.err (!%p3131_p10)
}
 0x10c   : > { %2748 = dma.hbm_to_vmem [thread:$0]  (!%p3787_p6), %s4667_s17, 16, %s708_s28, [#allocation32]  }
 0x10d   : > { %s2381_s0 = sadd.s32 4294967294, %s3605_s25   ;;  %s62_s12 = sadd.s32 1, %s3601_s2 }
 0x10e   : > { %p64_p1 = scmp.ge.s32.totalorder %s62_s12, 2  ;;  %s71_s30 = sadd.s32 1, %s3593_s23 }
 0x10f   : > { %p78_p3 = scmp.ne.s32.totalorder %s3593_s23, %s3589_s22  ;;  %p79_p11 = scmp.eq.s32.totalorder %s3605_s25, 0 }
 0x110   : > { %s4732_s12 = smov (%p64_p1, %s62_s12), 0  ;;  %p84_p13 = scmp.ne.s32.totalorder %s3589_s22, %s3585_s1 }
 0x111   : > { %4668 = sst [smem:[#allocation53_spill]] %s4732_s12  ;;  %p3968_p12 = por %p79_p11, %p78_p3 }
 0x112   : > { %s66_s28 = ssub.s32 %s3601_s2, %s4732_s12  ;;  %p526_p0 = scmp.eq.s32.totalorder %s3771_s3, 1 }
 0x113   : > { %p69_p2 = scmp.eq.s32.totalorder %s66_s28, 0  ;;  %p4670_p4 = scmp.eq.s32.totalorder %s3771_s3, 0 }
 0x114   : > { %p3983_p9 = por %p526_p0, %p78_p3  ;;  %p532_p5 = scmp.eq.s32.totalorder %s2381_s0, 1 }
 0x115   : > { %p3979_p7 = por %p4670_p4, %p84_p13  ;;  %p2788_p1 = scmp.lt.s32.totalorder %s3605_s25, 2 }
 0x116   : > { %s4672_s26 = scalar_select %p3983_p9, 1, 0 }
 0x117   : > { %s4671_s21 = scalar_select %p3979_p7, 1, 0 }
 0x118   : > { %s3988_s10 = scalar_select %p69_p2, %s3593_s23, %s71_s30  }
 0x119   : > { %p3990_p10 = por %p532_p5, %p84_p13  ;;  %s4612_s16 = sand.u32 1, %s3593_s23  }
 0x11a   : > { %4673 = sst [smem:[#allocation54_spill]] %s3988_s10  ;;  %s3997_s20 = sshll.u32 %s3601_s2, 7 }
 0x11b   : > { %s4674_s29 = scalar_select %p3990_p10, 1, 0 }
 0x11c   : > { %s4001_s24 = sshll.u32 %s4612_s16, 3  ;;  %p4005_p3 = pnand %p2788_p1, %p3968_p12 }
 0x11d   : > { %s4614_s0 = sand.u32 1, %s3605_s25   ;;  %s4676_s18 = sld [smem:[#allocation56_spill]] }
 0x11e   : > { %s4675_s27 = scalar_select %p4005_p3, 1, 0 }
 0x11f   : > { %s763_s7 = scalar_lea.vmem [#allocation7], %s4001_s24  ;;  %s4021_s8 = scalar_lea.sflag [#allocation8], %s4614_s0 }
 0x120   : > { %s770_s16 = sshll.u32 %s763_s7, 4  ;;  %p4027_p12 = pneg %p4005_p3  ;;  %s4017_s16 = int_to_ptr.vmem [resolvable:$true] %s770_s16 }
 0x122   : > { %s4677_s11 = scalar_select %p4027_p12, 1, 0 }
 0x123   : > { %s4014_s5 = scalar_lea.hbm %s4676_s18, %s3997_s20  ;;  %s3140_s7 = scalar_lea.hbm %s4676_s18, 256 }
 0x124   : > { %s3135_s9 = scalar_lea.hbm %s4014_s5, 128  ;;  %p3141_p2 = scmp.lt.u32.totalorder %s4014_s5, %s4676_s18 }
 0x125   : > { %p3136_p11 = scmp.ne.s32.totalorder %s4014_s5, %s3135_s9  ;;  %p3142_p4 = scmp.lt.u32.totalorder %s3140_s7, %s3135_s9 }
 0x126   : > { %p3144_p1 = scmp.lt.u32.totalorder %s3135_s9, %s4014_s5 }
 0x127   : > { %p3138_p13 = pnand %p4027_p12, %p3136_p11  ;;  %p3143_p5 = por %p3142_p4, %p3141_p2 }
 0x129   : > { %p3139_p0 = pneg %p3138_p13  ;;  %p3145_p10 = por %p3144_p1, %p3143_p5 }
 0x12b   : > { %p3146_p9 = pnand %p3145_p10, %p3139_p0 }
 0x12d   : > { %3149 = shalt.err (!%p3146_p9)
}
 0x12e   : > { %s3150_s0 = scalar_lea.vmem %s4017_s16, 128  ;;  %s3617_s30 = smov [#allocation7]  }
 0x12f   : > { %p3151_p11 = scmp.ne.s32.totalorder %s4017_s16, %s3150_s0  ;;  %s3155_s28 = sshll.u32 %s3617_s30, 4  ;;  %s3156_s28 = int_to_ptr.vmem [resolvable:$false] %s3155_s28 }
 0x130   : > { %s3157_s13 = scalar_lea.vmem %s3156_s28, 256  ;;  %p3158_p6 = scmp.lt.s32.totalorder %s4017_s16, %s3156_s28 }
 0x131   : > { %p3153_p13 = pnand %p3151_p11, %p4027_p12  ;;  %p3159_p8 = scmp.lt.s32.totalorder %s3157_s13, %s3150_s0 }
 0x133   : > { %p3154_p7 = pneg %p3153_p13  ;;  %p3160_p2 = por %p3159_p8, %p3158_p6 }
 0x135   : > { %p3161_p4 = pnand %p3160_p2, %p3154_p7 }
 0x137   : > { %3164 = shalt.err (!%p3161_p4)
}
 0x138   : > { %2761 = dma.hbm_to_vmem [thread:$0]  (!%p4005_p3), %s4014_s5, 128, %s4017_s16, %s4021_s8  }
 0x139   : > { %s3618_s9 = smov [#allocation15]   ;;  %s3619_s7 = smov [#allocation18]  }
 0x13a   : > { %s575_s15 = sshll.u32 %s3618_s9, 4  ;;  %s599_s17 = sshll.u32 %s3619_s7, 4  ;;  %s576_s15 = int_to_ptr.vmem [resolvable:$true] %s575_s15  ;;  %s4051_s17 = int_to_ptr.vmem [resolvable:$true] %s599_s17 }
 0x13b   : > { %s4678_s6 = sld [smem:[#allocation61_spill]]  ;;  %p4679_p8 = scmp.ne.s32.totalorder %s4660_s14, 0 }
 0x141   : > { %s3165_s0 = scalar_lea.hbm %s4678_s6, 256 }
 0x142   : > { %p3166_p6 = scmp.ne.s32.totalorder %s4678_s6, %s3165_s0  ;;  %p3172_p10 = scmp.lt.u32.totalorder %s3165_s0, %s4678_s6 }
 0x144   : > { %p3168_p7 = pnand %p3166_p6, %p4679_p8 }
 0x146   : > { %p3169_p9 = pneg %p3168_p7 }
 0x148   : > { %p3174_p0 = pnand %p3172_p10, %p3169_p9 }
 0x14a   : > { %3177 = shalt.err (!%p3174_p0)
}
 0x14b   : > { %s3178_s16 = scalar_lea.vmem %s576_s15, 256  ;;  %p3186_p13 = scmp.lt.s32.totalorder %s576_s15, %s576_s15 }
 0x14c   : > { %p3179_p5 = scmp.ne.s32.totalorder %s576_s15, %s3178_s16  ;;  %p3187_p2 = scmp.lt.s32.totalorder %s3178_s16, %s3178_s16 }
 0x14e   : > { %p3181_p1 = pnand %p3179_p5, %p4679_p8  ;;  %p3188_p4 = por %p3187_p2, %p3186_p13 }
 0x150   : > { %p3182_p11 = pneg %p3181_p1 }
 0x152   : > { %p3189_p3 = pnand %p3188_p4, %p3182_p11 }
 0x154   : > { %3192 = shalt.err (!%p3189_p3)
}
 0x155   : > { %p4680_p6 = scmp.ne.s32.totalorder %s4657_s4, 0  ;;  %s4681_s18 = smov 4  }
 0x156   : > { %s4682_s9 = smov 64   ;;  %s4683_s0 = sld [smem:[#allocation63_spill]] }
 0x157   : > { %2715 = dma.hbm_to_vmem [thread:$0]  (!%p4680_p6), %s4678_s6, 256, %s576_s15, [#allocation14], %s4682_s9, %s4682_s9, %s4681_s18  }
 0x15c   : > { %s3193_s13 = scalar_lea.hbm %s4683_s0, 256 }
 0x15d   : > { %p3194_p7 = scmp.ne.s32.totalorder %s4683_s0, %s3193_s13  ;;  %p3200_p10 = scmp.lt.u32.totalorder %s3193_s13, %s4683_s0 }
 0x15f   : > { %p3196_p3 = pnand %p3194_p7, %p4679_p8 }
 0x161   : > { %p3197_p9 = pneg %p3196_p3 }
 0x163   : > { %p3202_p0 = pnand %p3200_p10, %p3197_p9 }
 0x165   : > { %3205 = shalt.err (!%p3202_p0)
}
 0x166   : > { %s3206_s15 = scalar_lea.vmem %s4051_s17, 256  ;;  %p3214_p13 = scmp.lt.s32.totalorder %s4051_s17, %s4051_s17 }
 0x167   : > { %p3207_p5 = scmp.ne.s32.totalorder %s4051_s17, %s3206_s15  ;;  %p3215_p2 = scmp.lt.s32.totalorder %s3206_s15, %s3206_s15 }
 0x169   : > { %p3209_p1 = pnand %p3207_p5, %p4679_p8  ;;  %p3216_p4 = por %p3215_p2, %p3214_p13 }
 0x16b   : > { %p3210_p11 = pneg %p3209_p1 }
 0x16d   : > { %p3217_p7 = pnand %p3216_p4, %p3210_p11 }
 0x16f   : > { %3220 = shalt.err (!%p3217_p7)
}
 0x170   : > { %2721 = dma.hbm_to_vmem [thread:$0]  (!%p4680_p6), %s4683_s0, 256, %s4051_s17, [#allocation17], %s4682_s9, %s4682_s9, %s4681_s18  }
 0x171   : > { %s3620_s19 = smov [#allocation21]   ;;  %s3621_s30 = smov [#allocation24]  }
 0x172   : > { %s623_s7 = sshll.u32 %s3620_s19, 4  ;;  %s648_s28 = sshll.u32 %s3621_s30, 4  ;;  %s624_s7 = int_to_ptr.vmem [resolvable:$true] %s623_s7  ;;  %s4100_s28 = int_to_ptr.vmem [resolvable:$true] %s648_s28 }
 0x173   : > { %s4684_s16 = sld [smem:[#allocation65_spill]] }
 0x179   : > { %s3221_s15 = scalar_lea.hbm %s4684_s16, 256 }
 0x17a   : > { %p3222_p3 = scmp.ne.s32.totalorder %s4684_s16, %s3221_s15  ;;  %p3228_p0 = scmp.lt.u32.totalorder %s3221_s15, %s4684_s16 }
 0x17c   : > { %p3224_p9 = pnand %p3222_p3, %p4679_p8 }
 0x17e   : > { %p3225_p10 = pneg %p3224_p9 }
 0x180   : > { %p3230_p5 = pnand %p3228_p0, %p3225_p10 }
 0x182   : > { %3233 = shalt.err (!%p3230_p5)
}
 0x183   : > { %s3234_s12 = scalar_lea.vmem %s624_s7, 256  ;;  %p3242_p2 = scmp.lt.s32.totalorder %s624_s7, %s624_s7 }
 0x184   : > { %p3235_p1 = scmp.ne.s32.totalorder %s624_s7, %s3234_s12  ;;  %p3243_p4 = scmp.lt.s32.totalorder %s3234_s12, %s3234_s12 }
 0x186   : > { %p3237_p11 = pnand %p3235_p1, %p4679_p8  ;;  %p3244_p7 = por %p3243_p4, %p3242_p2 }
 0x188   : > { %p3238_p13 = pneg %p3237_p11 }
 0x18a   : > { %p3245_p12 = pnand %p3244_p7, %p3238_p13 }
 0x18c   : > { %3248 = shalt.err (!%p3245_p12)
}
 0x18d   : > { %2727 = dma.hbm_to_vmem [thread:$0]  (!%p4680_p6), %s4684_s16, 256, %s624_s7, [#allocation20], %s4682_s9, %s4682_s9, %s4681_s18  }
 0x18e   : > { %s4685_s13 = sld [smem:[#allocation67_spill]] }
 0x194   : > { %s3249_s5 = scalar_lea.hbm %s4685_s13, 16 }
 0x195   : > { %p3250_p3 = scmp.ne.s32.totalorder %s4685_s13, %s3249_s5  ;;  %p3256_p10 = scmp.lt.u32.totalorder %s3249_s5, %s4685_s13 }
 0x197   : > { %p3252_p12 = pnand %p3250_p3, %p4679_p8 }
 0x199   : > { %p3253_p9 = pneg %p3252_p12 }
 0x19b   : > { %p3258_p0 = pnand %p3256_p10, %p3253_p9 }
 0x19d   : > { %3261 = shalt.err (!%p3258_p0)
}
 0x19e   : > { %s3262_s7 = scalar_lea.vmem %s4100_s28, 16  ;;  %s3269_s6 = scalar_lea.vmem %s4100_s28, 32 }
 0x19f   : > { %p3263_p5 = scmp.ne.s32.totalorder %s4100_s28, %s3262_s7  ;;  %p3270_p13 = scmp.lt.s32.totalorder %s4100_s28, %s4100_s28 }
 0x1a0   : > { %p3271_p2 = scmp.lt.s32.totalorder %s3269_s6, %s3262_s7 }
 0x1a1   : > { %p3265_p1 = pnand %p3263_p5, %p4679_p8 }
 0x1a2   : > { %p3272_p4 = por %p3271_p2, %p3270_p13 }
 0x1a3   : > { %p3266_p11 = pneg %p3265_p1 }
 0x1a5   : > { %p3273_p7 = pnand %p3272_p4, %p3266_p11 }
 0x1a7   : > { %3276 = shalt.err (!%p3273_p7)
}
 0x1a8   : > { %2733 = dma.hbm_to_vmem [thread:$0]  (!%p4680_p6), %s4685_s13, 16, %s4100_s28, [#allocation23]  }
 0x1a9   : > { %s3622_s30 = smov [#allocation27]   ;;  %s3623_s15 = smov [#allocation30]  }
 0x1aa   : > { %s669_s5 = sshll.u32 %s3622_s30, 4  ;;  %s693_s2 = sshll.u32 %s3623_s15, 4  ;;  %s670_s5 = int_to_ptr.vmem [resolvable:$true] %s669_s5  ;;  %s4147_s2 = int_to_ptr.vmem [resolvable:$true] %s693_s2 }
 0x1ab   : > { %s4686_s7 = sld [smem:[#allocation69_spill]] }
 0x1b1   : > { %s3277_s6 = scalar_lea.hbm %s4686_s7, 256 }
 0x1b2   : > { %p3278_p3 = scmp.ne.s32.totalorder %s4686_s7, %s3277_s6  ;;  %p3284_p10 = scmp.lt.u32.totalorder %s3277_s6, %s4686_s7 }
 0x1b4   : > { %p3280_p12 = pnand %p3278_p3, %p4679_p8 }
 0x1b6   : > { %p3281_p9 = pneg %p3280_p12 }
 0x1b8   : > { %p3286_p0 = pnand %p3284_p10, %p3281_p9 }
 0x1ba   : > { %3289 = shalt.err (!%p3286_p0)
}
 0x1bb   : > { %s3290_s19 = scalar_lea.vmem %s670_s5, 256  ;;  %p3298_p13 = scmp.lt.s32.totalorder %s670_s5, %s670_s5 }
 0x1bc   : > { %p3291_p5 = scmp.ne.s32.totalorder %s670_s5, %s3290_s19  ;;  %p3299_p2 = scmp.lt.s32.totalorder %s3290_s19, %s3290_s19 }
 0x1be   : > { %p3293_p1 = pnand %p3291_p5, %p4679_p8  ;;  %p3300_p4 = por %p3299_p2, %p3298_p13 }
 0x1c0   : > { %p3294_p11 = pneg %p3293_p1 }
 0x1c2   : > { %p3301_p7 = pnand %p3300_p4, %p3294_p11 }
 0x1c4   : > { %3304 = shalt.err (!%p3301_p7)
}
 0x1c5   : > { %2739 = dma.hbm_to_vmem [thread:$0]  (!%p4680_p6), %s4686_s7, 256, %s670_s5, [#allocation26], %s4682_s9, %s4682_s9, %s4681_s18  }
 0x1c6   : > { %s4687_s17 = sld [smem:[#allocation71_spill]] }
 0x1cc   : > { %s3305_s12 = scalar_lea.hbm %s4687_s17, 512 }
 0x1cd   : > { %p3306_p3 = scmp.ne.s32.totalorder %s4687_s17, %s3305_s12  ;;  %p3312_p10 = scmp.lt.u32.totalorder %s3305_s12, %s4687_s17 }
 0x1cf   : > { %p3308_p12 = pnand %p3306_p3, %p4679_p8 }
 0x1d1   : > { %p3309_p9 = pneg %p3308_p12 }
 0x1d3   : > { %p3314_p0 = pnand %p3312_p10, %p3309_p9 }
 0x1d5   : > { %3317 = shalt.err (!%p3314_p0)
}
 0x1d6   : > { %s3318_s5 = scalar_lea.vmem %s4147_s2, 512  ;;  %p3326_p13 = scmp.lt.s32.totalorder %s4147_s2, %s4147_s2 }
 0x1d7   : > { %p3319_p5 = scmp.ne.s32.totalorder %s4147_s2, %s3318_s5  ;;  %p3327_p2 = scmp.lt.s32.totalorder %s3318_s5, %s3318_s5 }
 0x1d9   : > { %p3321_p1 = pnand %p3319_p5, %p4679_p8  ;;  %p3328_p4 = por %p3327_p2, %p3326_p13 }
 0x1db   : > { %p3322_p11 = pneg %p3321_p1 }
 0x1dd   : > { %p3329_p7 = pnand %p3328_p4, %p3322_p11 }
 0x1df   : > { %3332 = shalt.err (!%p3329_p7)
}
 0x1e0   : > { %2745 = dma.hbm_to_vmem [thread:$0]  (!%p4680_p6), %s4687_s17, 512, %s4147_s2, [#allocation29], %s4682_s9, %s4682_s9, %s4681_s18  }
 0x1e1   : > { %s3624_s30 = smov [#allocation33]   ;;  %s3625_s12 = smov [#allocation34]  }
 0x1e2   : > { %s718_s15 = sshll.u32 %s3624_s30, 4  ;;  %s729_s6 = sshll.u32 %s3625_s12, 4  ;;  %s719_s15 = int_to_ptr.vmem [resolvable:$true] %s718_s15  ;;  %s4196_s6 = int_to_ptr.vmem [resolvable:$true] %s729_s6 }
 0x1e3   : > { %s4688_s19 = sld [smem:[#allocation73_spill]] }
 0x1e9   : > { %s3333_s5 = scalar_lea.hbm %s4688_s19, 16 }
 0x1ea   : > { %p3334_p3 = scmp.ne.s32.totalorder %s4688_s19, %s3333_s5  ;;  %p3340_p10 = scmp.lt.u32.totalorder %s3333_s5, %s4688_s19 }
 0x1ec   : > { %p3336_p12 = pnand %p3334_p3, %p4679_p8 }
 0x1ee   : > { %p3337_p9 = pneg %p3336_p12 }
 0x1f0   : > { %p3342_p0 = pnand %p3340_p10, %p3337_p9 }
 0x1f2   : > { %3345 = shalt.err (!%p3342_p0)
}
 0x1f3   : > { %s3346_s9 = scalar_lea.vmem %s719_s15, 16  ;;  %s3353_s2 = scalar_lea.vmem %s719_s15, 32 }
 0x1f4   : > { %p3347_p5 = scmp.ne.s32.totalorder %s719_s15, %s3346_s9  ;;  %p3354_p13 = scmp.lt.s32.totalorder %s719_s15, %s719_s15 }
 0x1f5   : > { %p3355_p2 = scmp.lt.s32.totalorder %s3353_s2, %s3346_s9 }
 0x1f6   : > { %p3349_p1 = pnand %p3347_p5, %p4679_p8 }
 0x1f7   : > { %p3356_p4 = por %p3355_p2, %p3354_p13 }
 0x1f8   : > { %p3350_p11 = pneg %p3349_p1 }
 0x1fa   : > { %p3357_p7 = pnand %p3356_p4, %p3350_p11 }
 0x1fc   : > { %3360 = shalt.err (!%p3357_p7)
}
 0x1fd   : > { %2751 = dma.hbm_to_vmem [thread:$0]  (!%p4680_p6), %s4688_s19, 16, %s719_s15, [#allocation32]  }
 0x1fe   : > { %s4689_s12 = sld [smem:[#allocation74_spill]] }
 0x204   : > { %s3361_s10 = scalar_lea.hbm %s4689_s12, 16 }
 0x205   : > { %p3362_p3 = scmp.ne.s32.totalorder %s4689_s12, %s3361_s10  ;;  %p3368_p10 = scmp.lt.u32.totalorder %s3361_s10, %s4689_s12 }
 0x207   : > { %p3364_p12 = pnand %p3362_p3, %p4679_p8 }
 0x209   : > { %p3365_p9 = pneg %p3364_p12 }
 0x20b   : > { %p3370_p0 = pnand %p3368_p10, %p3365_p9 }
 0x20d   : > { %3373 = shalt.err (!%p3370_p0)
}
 0x20e   : > { %s3374_s15 = scalar_lea.vmem %s4196_s6, 16  ;;  %s3381_s9 = scalar_lea.vmem %s4196_s6, 32 }
 0x20f   : > { %p3375_p5 = scmp.ne.s32.totalorder %s4196_s6, %s3374_s15  ;;  %p3382_p13 = scmp.lt.s32.totalorder %s4196_s6, %s4196_s6 }
 0x210   : > { %p3383_p2 = scmp.lt.s32.totalorder %s3381_s9, %s3374_s15 }
 0x211   : > { %p3377_p1 = pnand %p3375_p5, %p4679_p8 }
 0x212   : > { %p3384_p4 = por %p3383_p2, %p3382_p13 }
 0x213   : > { %p3378_p11 = pneg %p3377_p1 }
 0x215   : > { %p3385_p7 = pnand %p3384_p4, %p3378_p11 }
 0x217   : > { %3388 = shalt.err (!%p3385_p7)
}
 0x218   : > { %2754 = dma.hbm_to_vmem [thread:$0]  (!%p4680_p6), %s4689_s12, 16, %s4196_s6, [#allocation35]  }
 0x219   : > { %s4690_s16 = sld [smem:[#allocation55_spill]]  ;;  %s744_s10 = scalar_lea.vmem [#allocation4], %s4001_s24 }
 0x21a   : > { %s752_s4 = sshll.u32 %s744_s10, 4  ;;  %s4691_s28 = sand.u32 1, %s3593_s23   ;;  %s753_s4 = int_to_ptr.vmem [resolvable:$true] %s752_s4 }
 0x21b   : > { %s741_s5 = scalar_lea.sflag [#allocation5], %s4691_s28  ;;  %p4692_p3 = scmp.ne.s32.totalorder %s4677_s11, 0 }
 0x21f   : > { %s4244_s30 = scalar_lea.hbm %s4690_s16, %s3997_s20  ;;  %s3394_s15 = scalar_lea.hbm %s4690_s16, 256 }
 0x220   : > { %s3389_s0 = scalar_lea.hbm %s4244_s30, 128  ;;  %p3395_p6 = scmp.lt.u32.totalorder %s4244_s30, %s4690_s16 }
 0x221   : > { %p3390_p8 = scmp.ne.s32.totalorder %s4244_s30, %s3389_s0  ;;  %p3396_p10 = scmp.lt.u32.totalorder %s3394_s15, %s3389_s0 }
 0x222   : > { %p3398_p5 = scmp.lt.u32.totalorder %s3389_s0, %s4244_s30 }
 0x223   : > { %p3392_p12 = pnand %p3390_p8, %p4692_p3  ;;  %p3397_p0 = por %p3396_p10, %p3395_p6 }
 0x225   : > { %p3393_p9 = pneg %p3392_p12  ;;  %p3399_p1 = por %p3398_p5, %p3397_p0 }
 0x227   : > { %p3400_p11 = pnand %p3399_p1, %p3393_p9 }
 0x229   : > { %3403 = shalt.err (!%p3400_p11)
}
 0x22a   : > { %s3404_s13 = scalar_lea.vmem %s753_s4, 128  ;;  %s3626_s14 = smov [#allocation4]  }
 0x22b   : > { %p3405_p13 = scmp.ne.s32.totalorder %s753_s4, %s3404_s13  ;;  %s3409_s7 = sshll.u32 %s3626_s14, 4  ;;  %s3410_s7 = int_to_ptr.vmem [resolvable:$false] %s3409_s7 }
 0x22c   : > { %s3411_s10 = scalar_lea.vmem %s3410_s7, 256  ;;  %p3412_p7 = scmp.lt.s32.totalorder %s753_s4, %s3410_s7 }
 0x22d   : > { %p3407_p2 = pnand %p3405_p13, %p4692_p3  ;;  %p3413_p8 = scmp.lt.s32.totalorder %s3411_s10, %s3404_s13 }
 0x22f   : > { %p3408_p4 = pneg %p3407_p2  ;;  %p3414_p12 = por %p3413_p8, %p3412_p7 }
 0x231   : > { %p3415_p6 = pnand %p3414_p12, %p3408_p4 }
 0x233   : > { %3418 = shalt.err (!%p3415_p6)
}
 0x234   : > { %p4693_p10 = scmp.ne.s32.totalorder %s4675_s27, 0  ;;  %s4694_s6 = sld [smem:[#allocation57_spill]] }
 0x235   : > { %s781_s15 = scalar_lea.vmem [#allocation9], %s4001_s24 }
 0x236   : > { %2758 = dma.hbm_to_vmem [thread:$0]  (!%p4693_p10), %s4244_s30, 128, %s753_s4, %s741_s5  }
 0x237   : > { %s789_s9 = sshll.u32 %s781_s15, 4  ;;  %s790_s9 = int_to_ptr.vmem [resolvable:$true] %s789_s9 }
 0x23a   : > { %s4270_s18 = scalar_lea.hbm %s4694_s6, %s3997_s20  ;;  %s3424_s30 = scalar_lea.hbm %s4694_s6, 256 }
 0x23b   : > { %s3419_s2 = scalar_lea.hbm %s4270_s18, 128  ;;  %p3425_p1 = scmp.lt.u32.totalorder %s4270_s18, %s4694_s6 }
 0x23c   : > { %p3420_p9 = scmp.ne.s32.totalorder %s4270_s18, %s3419_s2  ;;  %p3426_p11 = scmp.lt.u32.totalorder %s3424_s30, %s3419_s2 }
 0x23d   : > { %p3428_p2 = scmp.lt.u32.totalorder %s3419_s2, %s4270_s18 }
 0x23e   : > { %p3422_p0 = pnand %p3420_p9, %p4692_p3  ;;  %p3427_p13 = por %p3426_p11, %p3425_p1 }
 0x240   : > { %p3423_p5 = pneg %p3422_p0  ;;  %p3429_p4 = por %p3428_p2, %p3427_p13 }
 0x242   : > { %p3430_p7 = pnand %p3429_p4, %p3423_p5 }
 0x244   : > { %3433 = shalt.err (!%p3430_p7)
}
 0x245   : > { %s3434_s7 = scalar_lea.vmem %s790_s9, 128  ;;  %s3627_s10 = smov [#allocation9]  }
 0x246   : > { %p3435_p8 = scmp.ne.s32.totalorder %s790_s9, %s3434_s7  ;;  %s3439_s28 = sshll.u32 %s3627_s10, 4  ;;  %s3440_s28 = int_to_ptr.vmem [resolvable:$false] %s3439_s28 }
 0x247   : > { %s3441_s0 = scalar_lea.vmem %s3440_s28, 256  ;;  %p3442_p9 = scmp.lt.s32.totalorder %s790_s9, %s3440_s28 }
 0x248   : > { %p3437_p12 = pnand %p3435_p8, %p4692_p3  ;;  %p3443_p0 = scmp.lt.s32.totalorder %s3441_s0, %s3434_s7 }
 0x24a   : > { %p3438_p6 = pneg %p3437_p12  ;;  %p3444_p10 = por %p3443_p0, %p3442_p9 }
 0x24c   : > { %p3445_p1 = pnand %p3444_p10, %p3438_p6 }
 0x24e   : > { %3448 = shalt.err (!%p3445_p1)
}
 0x24f   : > { %p4695_p11 = scmp.ne.s32.totalorder %s4675_s27, 0  ;;  %s4696_s13 = sld [smem:[#allocation58_spill]] }
 0x250   : > { %s800_s30 = scalar_lea.vmem [#allocation10], %s4001_s24  ;;  %s4697_s5 = sand.u32 1, %s3605_s25  }
 0x251   : > { %2764 = dma.hbm_to_vmem [thread:$0]  (!%p4695_p11), %s4270_s18, 128, %s790_s9, %s4021_s8  }
 0x252   : > { %s807_s4 = sshll.u32 %s800_s30, 4  ;;  %s797_s7 = scalar_lea.sflag [#allocation11], %s4697_s5  ;;  %s808_s4 = int_to_ptr.vmem [resolvable:$true] %s807_s4 }
 0x255   : > { %s4295_s14 = scalar_lea.hbm %s4696_s13, %s3997_s20  ;;  %s3454_s9 = scalar_lea.hbm %s4696_s13, 256 }
 0x256   : > { %s3449_s10 = scalar_lea.hbm %s4295_s14, 128  ;;  %p3455_p2 = scmp.lt.u32.totalorder %s4295_s14, %s4696_s13 }
 0x257   : > { %p3450_p10 = scmp.ne.s32.totalorder %s4295_s14, %s3449_s10  ;;  %p3456_p4 = scmp.lt.u32.totalorder %s3454_s9, %s3449_s10 }
 0x258   : > { %p3458_p8 = scmp.lt.u32.totalorder %s3449_s10, %s4295_s14 }
 0x259   : > { %p3452_p5 = pnand %p3450_p10, %p4692_p3  ;;  %p3457_p7 = por %p3456_p4, %p3455_p2 }
 0x25b   : > { %p3453_p13 = pneg %p3452_p5  ;;  %p3459_p12 = por %p3458_p8, %p3457_p7 }
 0x25d   : > { %p3460_p6 = pnand %p3459_p12, %p3453_p13 }
 0x25f   : > { %3463 = shalt.err (!%p3460_p6)
}
 0x260   : > { %s3464_s24 = scalar_lea.vmem %s808_s4, 128  ;;  %s3628_s0 = smov [#allocation10]  }
 0x261   : > { %p3465_p9 = scmp.ne.s32.totalorder %s808_s4, %s3464_s24  ;;  %s3469_s15 = sshll.u32 %s3628_s0, 4  ;;  %s3470_s15 = int_to_ptr.vmem [resolvable:$false] %s3469_s15 }
 0x262   : > { %s3471_s2 = scalar_lea.vmem %s3470_s15, 256  ;;  %p3472_p10 = scmp.lt.s32.totalorder %s808_s4, %s3470_s15 }
 0x263   : > { %p3467_p0 = pnand %p3465_p9, %p4692_p3  ;;  %p3473_p5 = scmp.lt.s32.totalorder %s3471_s2, %s3464_s24 }
 0x265   : > { %p3468_p1 = pneg %p3467_p0  ;;  %p3474_p11 = por %p3473_p5, %p3472_p10 }
 0x267   : > { %p3475_p2 = pnand %p3474_p11, %p3468_p1 }
 0x269   : > { %3478 = shalt.err (!%p3475_p2)
}
 0x26a   : > { %p4698_p4 = scmp.ne.s32.totalorder %s4675_s27, 0  ;;  %s4699_s30 = sld [smem:[#allocation52_spill]] }
 0x26c   : > { %2767 = dma.hbm_to_vmem [thread:$0]  (!%p4698_p4), %s4295_s14, 128, %s808_s4, %s797_s7  }
 0x270   : > { %p4700_p13 = scmp.ne.s32.totalorder %s4699_s30, 0 }
 0x271   : > { %s4320_s11 = sand.u32 (!%p4700_p13), 1, %s3589_s22   ;;  %p4701_p3 = scmp.ne.s32.totalorder (!%p4700_p13), %s4671_s21, 0 }
 0x272   : > { %816 = sbr.rel (%p4700_p13) target bundleno = 4349 (0x10fd), region = 100  ;;  %s4323_s5 = sshll.u32 (!%p4700_p13), %s4320_s11, 3 }
 0x273   : > { %s819_s10 = scalar_lea.sflag (!%p4700_p13), [#allocation5], %s4320_s11  ;;  %s822_s8 = scalar_lea.vmem (!%p4700_p13), [#allocation4], %s4323_s5 }
 0x279   : > { %3532 = dma.done.wait (%p4701_p3), %s819_s10, 128  }
 0x27a   : > { %3534 = vsyncadd (%p4701_p3), %s819_s10, 4294967168  ;;  %s827_s27 = sand.u32 1, %s3771_s3   ;;  %s831_s4 = scalar_lea.vmem [#allocation7], %s4323_s5 }
 0x27b   : > { %s828_s14 = scalar_lea.sflag [#allocation8], %s827_s27 }
 0x27c   : > { %3536 = dma.done.wait (%p4701_p3), %s828_s14, 256  }
 0x27d   : > { %3538 = vsyncadd (%p4701_p3), %s828_s14, 4294967040  ;;  %s840_s7 = scalar_lea.vmem [#allocation9], %s4323_s5  ;;  %s846_s18 = scalar_lea.sflag [#allocation11], %s827_s27 }
 0x27e   : > { %s849_s9 = scalar_lea.vmem [#allocation10], %s4323_s5 }
 0x27f   : > { %3540 = dma.done.wait (%p4701_p3), %s846_s18, 128  }
 0x280   : > { %3542 = vsyncadd (%p4701_p3), %s846_s18, 4294967168  ;;  %p4702_p11 = scmp.eq.s32.totalorder %s3771_s3, 0 }
 0x282   : > { %3544 = dma.done.wait (%p4702_p11), [#allocation11], 256   ;;  %p4703_p7 = pmov %p4702_p11 }
 0x284   : > { %3546 = vsyncadd (%p4703_p7), [#allocation11], 4294967040  ;;  %p4704_p8 = pmov %p4703_p7 }
 0x285   : > { %p4705_p12 = pmov %p4703_p7 }
 0x286   : > { %3548 = dma.done.wait (%p4704_p8), [#allocation14], 272  }
 0x287   : > { %3550 = vsyncadd (%p4705_p12), [#allocation14], 4294967024  ;;  %p4706_p6 = pmov %p4703_p7 }
 0x289   : > { %3552 = dma.done.wait (%p4706_p6), [#allocation17], 272   ;;  %p4707_p9 = pmov %p4706_p6 }
 0x28a   : > { %p4708_p0 = pmov %p4706_p6 }
 0x28b   : > { %3554 = vsyncadd (%p4707_p9), [#allocation17], 4294967024 }
 0x28c   : > { %3556 = dma.done.wait (%p4708_p0), [#allocation20], 272   ;;  %p4709_p1 = pmov %p4708_p0 }
 0x28d   : > { %p4710_p10 = pmov %p4708_p0 }
 0x28e   : > { %3558 = vsyncadd (%p4709_p1), [#allocation20], 4294967024 }
 0x28f   : > { %3560 = dma.done.wait (%p4710_p10), [#allocation23], 32   ;;  %p4711_p5 = pmov %p4708_p0 }
 0x290   : > { %p4712_p2 = pmov %p4708_p0 }
 0x291   : > { %3562 = vsyncadd (%p4711_p5), [#allocation23], 4294967264 }
 0x292   : > { %3564 = dma.done.wait (%p4712_p2), [#allocation26], 272   ;;  %p4713_p4 = pmov %p4708_p0 }
 0x293   : > { %p4714_p13 = pmov %p4708_p0 }
 0x294   : > { %3566 = vsyncadd (%p4713_p4), [#allocation26], 4294967024 }
 0x295   : > { %3568 = dma.done.wait (%p4714_p13), [#allocation29], 528   ;;  %p4715_p3 = pmov %p4708_p0 }
 0x296   : > { %p4716_p11 = pmov %p4708_p0 }
 0x297   : > { %3570 = vsyncadd (%p4715_p3), [#allocation29], 4294966768 }
 0x298   : > { %3572 = dma.done.wait (%p4716_p11), [#allocation32], 32   ;;  %p4717_p7 = pmov %p4708_p0 }
 0x299   : > { %p4718_p8 = pmov %p4708_p0 }
 0x29a   : > { %3574 = vsyncadd (%p4717_p7), [#allocation32], 4294967264 }
 0x29b   : > { %3576 = dma.done.wait (%p4718_p8), [#allocation35], 16   ;;  %p4719_p12 = pmov %p4708_p0 }
 0x29c   : > { %v3629_v0 = vmov 0.0   ;;  %vm3630_vm0 = vmmov 0   ;;  %v2877_v1 = vld [vmem:[#allocation15] sm:$0xff]   ;;  %v2878_v2 = vld [vmem:[#allocation15 + $0x8] sm:$0xff]   ;;  %vm1017_vm1 = vcmask 261120   ;;  %v2880_v9 = vld [vmem:[#allocation12 + $0x8] sm:$0xff]  }
 0x29d   : > { %3578 = vsyncadd (%p4719_p12), [#allocation35], 4294967280  ;;  %2516 = vmatprep.subr.bf16.mxu1 %v3629_v0  ;;  %2520 = vmatprep.mubr.msk.bf16.mxu1 %vm3630_vm0, %v3629_v0  ;;  %v990_v3 = vld [vmem:[%s831_s4] sm:$0xff]  ;;  %v2879_v6 = vld [vmem:[#allocation12] sm:$0xff]   ;;  %vm1129_vm2 = vcmask 257024   ;;  %vm1207_vm3 = vcmask 64512  }
 0x29e   : > { %2532 = vmatprep.subr.bf16.mxu0 %v3629_v0  ;;  %2536 = vmatprep.mubr.msk.bf16.mxu0 %vm3630_vm0, %v3629_v0  ;;  %v991_v4 = vld [vmem:[%s849_s9] sm:$0xff]  ;;  %v4392_v7 = vld [vmem:[%s822_s8] sm:$0xff]  ;;  %v1061_v15 = vpack.c.bf16 %v990_v3, %v990_v3  ;;  %s3631_s3 = smov 120   ;;  %vm1269_vm4 = vcmask 1043456   ;;  %s3632_s21 = smov 112   ;;  %vm1991_vm5 = vcmask 523264  }
 0x29f   : > { %2517 = vmatpush3.bf16.msra.mxu1 %v2877_v1  ;;  %v992_v5 = vadd.f32 %v991_v4, %v990_v3  ;;  %2533 = vmatpush3.bf16.msra.mxu0 %v2879_v6  ;;  %v1134_v10 = vld [vmem:[%s840_s7] sm:$0xff]  ;;  %v2438_v27 = vld [vmem:[#allocation13] ss:$0 sm:$0xff]  ;;  %v2434_v33 = vld [vmem:[#allocation19] ss:$0 sm:$0xff]  ;;  %s3633_s20 = smov 104  }
 0x2a0   : > { %2518 = vmatprep.subr.bf16.mxu1 %v3629_v0  ;;  %2534 = vmatprep.subr.bf16.mxu0 %v3629_v0  ;;  %v1135_v11 = vadd.f32 %v1134_v10, %v4392_v7  ;;  %v2881_v13 = vld [vmem:[#allocation18] sm:$0xff]   ;;  %v2882_v14 = vld [vmem:[#allocation18 + $0x8] sm:$0xff]   ;;  %v2430_v16 = vld [vmem:[#allocation16] ss:$0 sm:$0xff]  ;;  %s4720_s28 = sld [smem:[#allocation50_spill]]  ;;  %s984_s0 = scalar_lea.vmem [#allocation36], %s4323_s5 }
 0x2a1   : > { %v993_v8 = vpack.c.bf16 %v992_v5, %v992_v5  ;;  %s2081_s15 = sshll.u32 %s984_s0, 4  ;;  %s4721_s10 = sld [smem:[#allocation75_spill]]  ;;  %s4523_s15 = int_to_ptr.vmem [resolvable:$true] %s2081_s15 }
 0x2a2   : > { %v1136_v12 = vpack.c.bf16 %v1135_v11, %v1135_v11  ;;  %s2067_s27 = scalar_lea.sflag [#allocation6], %s4320_s11  ;;  %s3479_s14 = scalar_lea.vmem %s4523_s15, 128 }
 0x2a3   : > { %2519 = vmatpush3.bf16.msra.mxu1 %v2878_v2  ;;  %2535 = vmatpush3.bf16.msra.mxu0 %v2880_v9  ;;  %p3480_p6 = scmp.ne.s32.totalorder %s4523_s15, %s3479_s14  ;;  %p4722_p9 = scmp.ne.s32.totalorder %s4672_s26, 0 }
 0x2a4   : > { %2524 = vmatprep.subr.bf16.mxu1 %v3629_v0  ;;  %2546 = vmatprep.subr.bf16.mxu0 %v3629_v0  ;;  %s3634_s5 = smov [#allocation36]  }
 0x2a5   : > { %p3481_p0 = pnand %p3480_p6, %p4722_p9  ;;  %s3483_s4 = sshll.u32 %s3634_s5, 4  ;;  %s3484_s4 = int_to_ptr.vmem [resolvable:$false] %s3483_s4 }
 0x2a6   : > { %2521 = vmatmul.mubr.msk.bf16.vlgmr.msra.gmra.mrb[0].mxu1 %vm1017_vm1, %v993_v8  ;;  %2537 = vmatmul.mubr.msk.bf16.vlgmr.msra.gmra.mrb[0].mxu0 %vm1017_vm1, %v1136_v12  ;;  %v1433_v8 = vld [vmem:[#allocation21 + $0x4] sm:$0xf]  ;;  %s2472_s24 = sshll.u32 %s4720_s28, 7  ;;  %s3485_s7 = scalar_lea.vmem %s3484_s4, 256 }
 0x2a7   : > { %2528 = vmatprep.mubr.msk.bf16.mxu1 %vm3630_vm0, %v3629_v0  ;;  %2548 = vmatprep.mubr.msk.bf16.mxu0 %vm3630_vm0, %v3629_v0  ;;  %v1438_v9 = vsel %vm1269_vm4, %v1433_v8, 0  ;;  %s4521_s8 = scalar_lea.hbm %s4721_s10, %s2472_s24  ;;  %p3482_p1 = pneg %p3481_p0 }
 0x2a8   : > { %2525 = vmatpush3.bf16.msra.mxu1 %v2881_v13  ;;  %p3486_p10 = scmp.lt.s32.totalorder %s4523_s15, %s3484_s4  ;;  %p3487_p5 = scmp.lt.s32.totalorder %s3485_s7, %s3479_s14 }
 0x2a9   : > { %2526 = vmatprep.subr.bf16.mxu1 %v3629_v0 }
 0x2aa   : > { %p3488_p2 = por %p3487_p5, %p3486_p10 }
 0x2ac   : > { %2527 = vmatpush3.bf16.msra.mxu1 %v2882_v14  ;;  %v1314_v14 = vld [vmem:[#allocation21] sm:$0xf]  ;;  %p3489_p4 = pnand %p3488_p2, %p3482_p1 }
 0x2ad   : > { %2540 = vmatprep.subr.bf16.mxu1 %v3629_v0 }
 0x2af   : > { %2529 = vmatmul.mubr.msk.bf16.vlgmr.msra.gmra.mrb[4].mxu1 %vm1017_vm1, %v1061_v15 }
 0x2b0   : > { %2542 = vmatprep.mubr.msk.bf16.mxu1 %vm3630_vm0, %v3629_v0 }
 0x379   : > { %v1055_v17 = vpop.f32.mrb[0].mxu1  ;;  %v1198_v23 = vpop.f32.mrb[0].mxu0 }
 0x37a   : > { %v1056_v18 = vadd.f32 %v2430_v16, %v1055_v17  ;;  %v2522_v19 = vpop.f32.mrb[1].mxu1  ;;  %v2538_v24 = vpop.f32.mrb[1].mxu0  ;;  %v1199_v31 = vadd.f32 %v2438_v27, %v1198_v23  ;;  %v1484_v17 = vsel %vm1269_vm4, %v1314_v14, 0 }
 0x37b   : > { %v1058_v20 = vpop.f32.mrb[2].mxu1  ;;  %v1201_v25 = vpop.f32.mrb[2].mxu0 }
 0x37c   : > { %v1128_v21 = vpack.c.bf16 %v1056_v18, %v1056_v18  ;;  %v2523_v22 = vpop.f32.mrb[3].mxu1  ;;  %v2539_v26 = vpop.f32.mrb[3].mxu0  ;;  %v4418_v32 = vpack.c.bf16 %v1199_v31, %v1199_v31 }
 0x37e   : > { %1130 = vst.msk [vmem:[#allocation2] sm:$0xf] %vm1129_vm2, %v1128_v21 }
 0x382   : > { %v1122_v34 = vpop.f32.mrb[4].mxu1 }
 0x383   : > { %v1123_v35 = vadd.f32 %v2434_v33, %v1122_v34  ;;  %v2530_v36 = vpop.f32.mrb[5].mxu1 }
 0x384   : > { %v1125_v37 = vpop.f32.mrb[6].mxu1 }
 0x385   : > { %v1205_v28 = vld [vmem:[#allocation2] sm:$0xf]  ;;  %v1131_v38 = vpack.c.bf16 %v1123_v35, %v1123_v35  ;;  %v2531_v39 = vpop.f32.mrb[7].mxu1 }
 0x386   : > { %v1212_v29 = vsel %vm1207_vm3, %v1205_v28, 0  ;;  %v4413_v30 = vcombine.low %v1205_v28, %v1205_v28 }
 0x387   : > { %2541 = vmatpush3.bf16.xpose.msra.mxu1 %v1212_v29  ;;  %1132 = vst.msk [vmem:[#allocation3] sm:$0xf] %vm1129_vm2, %v1131_v38 }
 0x388   : > { %1321 = vrot.lane.b32.xlu0 %v4413_v30, %s3631_s3  ;;  %2552 = vmatprep.subr.bf16.mxu1 %v3629_v0 }
 0x38c   : > { %1316 = vrot.lane.b32.xlu0 %v4418_v32, %s3631_s3 }
 0x38e   : > { %2543 = vmatmul.mubr.msk.bf16.vlgmr.msra.gmra.mrb[8].mxu1 %vm1207_vm3, %v4418_v32  ;;  %v1206_v40 = vld [vmem:[#allocation3] sm:$0xf] }
 0x38f   : > { %2554 = vmatprep.mubr.msk.bf16.mxu1 %vm3630_vm0, %v3629_v0  ;;  %v1271_v41 = vsel %vm1269_vm4, %v1206_v40, 0  ;;  %v4437_v60 = vcombine.low %v1206_v40, %v1206_v40 }
 0x390   : > { %2547 = vmatpush3.bf16.msra.mxu0 %v1271_v41 }
 0x391   : > { %2558 = vmatprep.subr.bf16.mxu0 %v3629_v0 }
 0x3fa   : > { %v1322_v42 = vpop.permute.xlu0 %1321 }
 0x3fb   : > { %v1327_v43 = vsel %vm1207_vm3, %v1322_v42, 0 }
 0x3fc   : > { %2553 = vmatpush3.bf16.xpose.msra.mxu1 %v1327_v43 }
 0x3fd   : > { %2564 = vmatprep.subr.bf16.mxu1 %v3629_v0 }
 0x3fe   : > { %v1317_v44 = vpop.permute.xlu0 %1316 }
 0x403   : > { %2555 = vmatmul.mubr.msk.bf16.vlgmr.msra.gmra.mrb[12].mxu1 %vm1207_vm3, %v1317_v44 }
 0x404   : > { %2566 = vmatprep.mubr.msk.bf16.mxu1 %vm3630_vm0, %v3629_v0  ;;  %2565 = vmatpush3.bf16.msra.mxu1 %v1438_v9 }
 0x405   : > { %2576 = vmatprep.subr.bf16.mxu1 %v3629_v0 }
 0x461   : > { %v1248_v45 = vpop.f32.mrb[8].mxu1 }
 0x462   : > { %v2544_v46 = vpop.f32.mrb[9].mxu1  ;;  %v1254_v47 = vsel %vm1207_vm3, %v1248_v45, -inf }
 0x463   : > { %1255 = vmax.xlane.f32.xlu1 %v1254_v47  ;;  %v1251_v48 = vpop.f32.mrb[10].mxu1 }
 0x464   : > { %v2545_v49 = vpop.f32.mrb[11].mxu1 }
 0x4d6   : > { %v1363_v50 = vpop.f32.mrb[12].mxu1 }
 0x4d7   : > { %v2556_v51 = vpop.f32.mrb[13].mxu1  ;;  %v1369_v52 = vsel %vm1207_vm3, %v1363_v50, -inf }
 0x4d8   : > { %1370 = vmax.xlane.f32.xlu1 %v1369_v52  ;;  %v1366_v53 = vpop.f32.mrb[14].mxu1 }
 0x4d9   : > { %v2557_v54 = vpop.f32.mrb[15].mxu1 }
 0x4f0   : > { %v1256_v55 = vpop.xlane.xlu1 %1255 }
 0x4f1   : > { %v1257_v56 = vsub.f32 %v1248_v45, %v1256_v55 }
 0x4f3   : > { %v1258_v57 = vmul.f32 1.442695, %v1257_v56 }
 0x4f5   : > { %2891 = vpow2.f32 %v1258_v57 }
 0x4ff   : > { %v2892_v58 = vpop.eup %2891 }
 0x500   : > { %v1260_v59 = vsel %vm1207_vm3, %v2892_v58, 0.0 }
 0x501   : > { %1261 = vadd.xlane.f32.xlu0 %v1260_v59 }
 0x517   : > { %1588 = vrot.lane.b32.xlu0 %v4437_v60, %s3632_s21 }
 0x565   : > { %v1371_v61 = vpop.xlane.xlu1 %1370 }
 0x566   : > { %v1372_v62 = vsub.f32 %v1363_v50, %v1371_v61 }
 0x568   : > { %v1373_v63 = vmul.f32 1.442695, %v1372_v62 }
 0x56a   : > { %2893 = vpow2.f32 %v1373_v63 }
 0x574   : > { %v2894_v1 = vpop.eup %2893 }
 0x575   : > { %v1375_v2 = vsel %vm1207_vm3, %v2894_v1, 0.0 }
 0x576   : > { %1376 = vadd.xlane.f32.xlu1 %v1375_v2 }
 0x587   : > { %1384 = vrot.lane.b32.xlu1 %v4437_v60, %s3631_s3 }
 0x58b   : > { %1528 = vrot.lane.b32.xlu1 %v4413_v30, %s3632_s21 }
 0x58e   : > { %v1262_v3 = vpop.xlane.xlu0 %1261 }
 0x58f   : > { %2895 = vrcp.f32 %v1262_v3  ;;  %1526 = vrot.lane.b32.xlu1 %v4418_v32, %s3632_s21 }
 0x592   : > { %v1589_v18 = vpop.permute.xlu0 %1588 }
 0x593   : > { %v1594_v23 = vsel %vm1269_vm4, %v1589_v18, 0 }
 0x599   : > { %v2896_v4 = vpop.eup %2895 }
 0x59a   : > { %v1264_v5 = vmul.f32 %v2896_v4, %v2892_v58 }
 0x59c   : > { %v1265_v6 = vpack.c.bf16 %v1264_v5, %v1264_v5 }
 0x59e   : > { %2549 = vmatmul.mubr.msk.bf16.vlgmr.msra.gmra.mrb[4].mxu0 %vm1207_vm3, %v1265_v6 }
 0x59f   : > { %2560 = vmatprep.mubr.msk.bf16.mxu0 %vm3630_vm0, %v3629_v0 }
 0x603   : > { %v1377_v10 = vpop.xlane.xlu1 %1376 }
 0x604   : > { %2897 = vrcp.f32 %v1377_v10 }
 0x607   : > { %v1385_v11 = vpop.permute.xlu1 %1384 }
 0x608   : > { %v1390_v12 = vsel %vm1269_vm4, %v1385_v11, 0 }
 0x609   : > { %2559 = vmatpush3.bf16.msra.mxu0 %v1390_v12 }
 0x60a   : > { %2570 = vmatprep.subr.bf16.mxu0 %v3629_v0 }
 0x60b   : > { %v1529_v25 = vpop.permute.xlu1 %1528 }
 0x60c   : > { %v1534_v31 = vsel %vm1207_vm3, %v1529_v25, 0 }
 0x60e   : > { %v2898_v13 = vpop.eup %2897 }
 0x60f   : > { %v1379_v15 = vmul.f32 %v2898_v13, %v2894_v1  ;;  %v1527_v34 = vpop.permute.xlu1 %1526 }
 0x611   : > { %v1380_v16 = vpack.c.bf16 %v1379_v15, %v1379_v15  ;;  %v1796_v15 = vld [vmem:[#allocation21 + $0xc] sm:$0xf] }
 0x613   : > { %2561 = vmatmul.mubr.msk.bf16.vlgmr.msra.gmra.mrb[8].mxu0 %vm1207_vm3, %v1380_v16  ;;  %v1801_v16 = vsel %vm1269_vm4, %v1796_v15, 0 }
 0x614   : > { %2571 = vmatpush3.bf16.msra.mxu0 %v1484_v17  ;;  %2572 = vmatprep.mubr.msk.bf16.mxu0 %vm3630_vm0, %v3629_v0 }
 0x615   : > { %2582 = vmatprep.subr.bf16.mxu0 %v3629_v0 }
 0x671   : > { %v1307_v19 = vpop.f32.mrb[4].mxu0 }
 0x672   : > { %v1313_v20 = vpack.c.bf16 %v1307_v19, %v1307_v19  ;;  %v2550_v21 = vpop.f32.mrb[5].mxu0 }
 0x673   : > { %v1310_v22 = vpop.f32.mrb[6].mxu0 }
 0x674   : > { %v2551_v24 = vpop.f32.mrb[7].mxu0  ;;  %2573 = vmatmul.mubr.msk.bf16.vlgmr.msra.gmra.mrb[12].mxu0 %vm1207_vm3, %v1313_v20 }
 0x675   : > { %2583 = vmatpush3.bf16.msra.mxu0 %v1594_v23  ;;  %2584 = vmatprep.mubr.msk.bf16.mxu0 %vm3630_vm0, %v3629_v0 }
 0x676   : > { %2594 = vmatprep.subr.bf16.mxu0 %v3629_v0 }
 0x6e6   : > { %v1426_v26 = vpop.f32.mrb[8].mxu0 }
 0x6e7   : > { %v1432_v27 = vpack.c.bf16 %v1426_v26, %v1426_v26  ;;  %v2562_v28 = vpop.f32.mrb[9].mxu0 }
 0x6e8   : > { %v1429_v29 = vpop.f32.mrb[10].mxu0 }
 0x6e9   : > { %v2563_v33 = vpop.f32.mrb[11].mxu0  ;;  %2567 = vmatmul.mubr.msk.bf16.vlgmr.msra.gmra.mrb[16].mxu1 %vm1207_vm3, %v1432_v27 }
 0x6ea   : > { %2577 = vmatpush3.bf16.xpose.msra.mxu1 %v1534_v31  ;;  %2578 = vmatprep.mubr.msk.bf16.mxu1 %vm3630_vm0, %v3629_v0 }
 0x6eb   : > { %2588 = vmatprep.subr.bf16.mxu1 %v3629_v0 }
 0x6f1   : > { %2579 = vmatmul.mubr.msk.bf16.vlgmr.msra.gmra.mrb[20].mxu1 %vm1207_vm3, %v1527_v34 }
 0x6f2   : > { %2590 = vmatprep.mubr.msk.bf16.mxu1 %vm3630_vm0, %v3629_v0 }
 0x747   : > { %v1520_v35 = vpop.f32.mrb[12].mxu0 }
 0x748   : > { %v2574_v36 = vpop.f32.mrb[13].mxu0 }
 0x749   : > { %v1523_v37 = vpop.f32.mrb[14].mxu0 }
 0x74a   : > { %v2575_v38 = vpop.f32.mrb[15].mxu0 }
 0x7bc   : > { %v1474_v39 = vpop.f32.mrb[16].mxu1 }
 0x7bd   : > { %v4470_v40 = vadd.f32 %v1520_v35, %v1474_v39  ;;  %v2568_v41 = vpop.f32.mrb[17].mxu1  ;;  %v2456_v35 = vld [vmem:[#allocation22] ss:$0 sm:$0xff] }
 0x7be   : > { %v1477_v42 = vpop.f32.mrb[18].mxu1 }
 0x7bf   : > { %v2569_v43 = vpop.f32.mrb[19].mxu1 }
 0x7c4   : > { %v1570_v44 = vpop.f32.mrb[20].mxu1 }
 0x7c5   : > { %v2580_v45 = vpop.f32.mrb[21].mxu1  ;;  %v1576_v46 = vsel %vm1207_vm3, %v1570_v44, -inf }
 0x7c6   : > { %1577 = vmax.xlane.f32.xlu1 %v1576_v46  ;;  %v1573_v47 = vpop.f32.mrb[22].mxu1 }
 0x7c7   : > { %v2581_v48 = vpop.f32.mrb[23].mxu1 }
 0x7c8   : > { %v2885_v48 = vld [vmem:[#allocation27] sm:$0xff]  }
 0x853   : > { %v1578_v49 = vpop.xlane.xlu1 %1577 }
 0x854   : > { %v1579_v50 = vsub.f32 %v1570_v44, %v1578_v49  ;;  %v2886_v49 = vld [vmem:[#allocation27 + $0x8] sm:$0xff]  }
 0x856   : > { %v1580_v51 = vmul.f32 1.442695, %v1579_v50  ;;  %v2887_v50 = vld [vmem:[#allocation30] sm:$0xff]  }
 0x858   : > { %2899 = vpow2.f32 %v1580_v51  ;;  %v2888_v51 = vld [vmem:[#allocation30 + $0x8] sm:$0xff]  }
 0x862   : > { %v2900_v52 = vpop.eup %2899 }
 0x863   : > { %v1582_v53 = vsel %vm1207_vm3, %v2900_v52, 0.0 }
 0x864   : > { %1583 = vadd.xlane.f32.xlu0 %v1582_v53 }
 0x87a   : > { %1687 = vrot.lane.b32.xlu0 %v4413_v30, %s3633_s20 }
 0x87e   : > { %1685 = vrot.lane.b32.xlu0 %v4418_v32, %s3633_s20  ;;  %v1637_v32 = vld [vmem:[#allocation21 + $0x8] sm:$0xf] }
 0x87f   : > { %v1642_v61 = vsel %vm1269_vm4, %v1637_v32, 0  ;;  %v2889_v32 = vld [vmem:[#allocation30 + $0x10] sm:$0xff]  }
 0x880   : > { %2589 = vmatpush3.bf16.msra.mxu1 %v1642_v61  ;;  %v2890_v61 = vld [vmem:[#allocation30 + $0x18] sm:$0xff]  }
 0x881   : > { %2600 = vmatprep.subr.bf16.mxu1 %v3629_v0 }
 0x8f1   : > { %v1584_v54 = vpop.xlane.xlu0 %1583 }
 0x8f2   : > { %2901 = vrcp.f32 %v1584_v54 }
 0x8f5   : > { %v1688_v57 = vpop.permute.xlu0 %1687 }
 0x8f6   : > { %v1693_v59 = vsel %vm1207_vm3, %v1688_v57, 0  ;;  %v2458_v57 = vld [vmem:[#allocation25] ss:$0 sm:$0xff] }
 0x8f9   : > { %v1686_v30 = vpop.permute.xlu0 %1685 }
 0x8fc   : > { %v2902_v55 = vpop.eup %2901 }
 0x8fd   : > { %v1586_v56 = vmul.f32 %v2902_v55, %v2900_v52  ;;  %v2457_v55 = vld [vmem:[#allocation24] ss:$0 sm:$0xff] }
 0x8ff   : > { %v1587_v58 = vpack.c.bf16 %v1586_v56, %v1586_v56 }
 0x901   : > { %2585 = vmatmul.mubr.msk.bf16.vlgmr.msra.gmra.mrb[16].mxu0 %vm1207_vm3, %v1587_v58 }
 0x902   : > { %2595 = vmatpush3.bf16.xpose.msra.mxu0 %v1693_v59  ;;  %2596 = vmatprep.mubr.msk.bf16.mxu0 %vm3630_vm0, %v3629_v0 }
 0x903   : > { %2606 = vmatprep.subr.bf16.mxu0 %v3629_v0 }
 0x909   : > { %2597 = vmatmul.mubr.msk.bf16.vlgmr.msra.gmra.mrb[20].mxu0 %vm1207_vm3, %v1686_v30 }
 0x90a   : > { %2608 = vmatprep.mubr.msk.bf16.mxu0 %vm3630_vm0, %v3629_v0  ;;  %2607 = vmatpush3.bf16.msra.mxu0 %v1801_v16 }
 0x90b   : > { %2620 = vmatprep.subr.bf16.mxu0 %v3629_v0 }
 0x9d4   : > { %v1630_v62 = vpop.f32.mrb[16].mxu0 }
 0x9d5   : > { %v1636_v63 = vpack.c.bf16 %v1630_v62, %v1630_v62  ;;  %v2586_v1 = vpop.f32.mrb[17].mxu0  ;;  %v2459_v62 = vld [vmem:[#allocation28] ss:$0 sm:$0xff] }
 0x9d6   : > { %v1633_v2 = vpop.f32.mrb[18].mxu0 }
 0x9d7   : > { %v2587_v3 = vpop.f32.mrb[19].mxu0  ;;  %2591 = vmatmul.mubr.msk.bf16.vlgmr.msra.gmra.mrb[24].mxu1 %vm1207_vm3, %v1636_v63 }
 0x9d8   : > { %2602 = vmatprep.mubr.msk.bf16.mxu1 %vm3630_vm0, %v3629_v0 }
 0x9dc   : > { %v1729_v4 = vpop.f32.mrb[20].mxu0 }
 0x9dd   : > { %v2598_v5 = vpop.f32.mrb[21].mxu0  ;;  %v1735_v6 = vsel %vm1207_vm3, %v1729_v4, -inf }
 0x9de   : > { %1736 = vmax.xlane.f32.xlu0 %v1735_v6  ;;  %v1732_v8 = vpop.f32.mrb[22].mxu0 }
 0x9df   : > { %v2599_v9 = vpop.f32.mrb[23].mxu0  ;;  %v2463_v8 = vld [vmem:[#allocation31] ss:$0 sm:$0xff] }
 0xa6b   : > { %v1737_v10 = vpop.xlane.xlu0 %1736 }
 0xa6c   : > { %v1738_v11 = vsub.f32 %v1729_v4, %v1737_v10 }
 0xa6e   : > { %v1739_v12 = vmul.f32 1.442695, %v1738_v11 }
 0xa70   : > { %2903 = vpow2.f32 %v1739_v12 }
 0xa7a   : > { %v2904_v13 = vpop.eup %2903 }
 0xa7b   : > { %v1741_v14 = vsel %vm1207_vm3, %v2904_v13, 0.0 }
 0xa7c   : > { %1742 = vadd.xlane.f32.xlu1 %v1741_v14 }
 0xa8d   : > { %1747 = vrot.lane.b32.xlu1 %v4437_v60, %s3633_s20 }
 0xaaa   : > { %v1678_v17 = vpop.f32.mrb[24].mxu1 }
 0xaab   : > { %v1684_v18 = vadd.f32 %v1678_v17, %v4470_v40  ;;  %v2592_v19 = vpop.f32.mrb[25].mxu1 }
 0xaac   : > { %v1681_v20 = vpop.f32.mrb[26].mxu1 }
 0xaad   : > { %v2593_v21 = vpop.f32.mrb[27].mxu1 }
 0xb09   : > { %v1743_v22 = vpop.xlane.xlu1 %1742 }
 0xb0a   : > { %2905 = vrcp.f32 %v1743_v22 }
 0xb0d   : > { %v1748_v23 = vpop.permute.xlu1 %1747 }
 0xb0e   : > { %v1753_v24 = vsel %vm1269_vm4, %v1748_v23, 0 }
 0xb0f   : > { %2601 = vmatpush3.bf16.msra.mxu1 %v1753_v24  ;;  %v2469_v24 = vld [vmem:[#allocation33] ss:$0 sm:$0xff] }
 0xb10   : > { %2612 = vmatprep.subr.bf16.mxu1 %v3629_v0 }
 0xb14   : > { %v2906_v60 = vpop.eup %2905 }
 0xb15   : > { %v1745_v25 = vmul.f32 %v2906_v60, %v2904_v13 }
 0xb17   : > { %v1746_v26 = vpack.c.bf16 %v1745_v25, %v1745_v25  ;;  %v2470_v25 = vld [vmem:[#allocation34] ss:$0 sm:$0xff] }
 0xb19   : > { %2603 = vmatmul.mubr.msk.bf16.vlgmr.msra.gmra.mrb[28].mxu1 %vm1207_vm3, %v1746_v26 }
 0xb1a   : > { %2616 = vmatprep.mubr.msk.bf16.mxu1 %vm3630_vm0, %v3629_v0  ;;  %2613 = vmatpush3.bf16.msra.mxu1 %v2885_v48 }
 0xb1b   : > { %2614 = vmatprep.subr.bf16.mxu1 %v3629_v0 }
 0xb1e   : > { %2615 = vmatpush3.bf16.msra.mxu1 %v2886_v49 }
 0xbec   : > { %v1789_v27 = vpop.f32.mrb[28].mxu1 }
 0xbed   : > { %v1795_v28 = vpack.c.bf16 %v1789_v27, %v1789_v27  ;;  %v2604_v29 = vpop.f32.mrb[29].mxu1 }
 0xbee   : > { %v1792_v31 = vpop.f32.mrb[30].mxu1 }
 0xbef   : > { %v2605_v33 = vpop.f32.mrb[31].mxu1  ;;  %2609 = vmatmul.mubr.msk.bf16.vlgmr.msra.gmra.mrb[24].mxu0 %vm1207_vm3, %v1795_v28 }
 0xbf0   : > { %2628 = vmatprep.mubr.msk.bf16.mxu0 %vm3630_vm0, %v3629_v0  ;;  %2621 = vmatpush3.bf16.msra.mxu0 %v2887_v50 }
 0xbf1   : > { %2622 = vmatprep.subr.bf16.mxu0 %v3629_v0 }
 0xbf4   : > { %2623 = vmatpush3.bf16.msra.mxu0 %v2888_v51 }
 0xbf5   : > { %2624 = vmatprep.subr.bf16.mxu0 %v3629_v0 }
 0xbf8   : > { %2625 = vmatpush3.bf16.msra.mxu0 %v2889_v32 }
 0xbf9   : > { %2626 = vmatprep.subr.bf16.mxu0 %v3629_v0 }
 0xbfc   : > { %2627 = vmatpush3.bf16.msra.mxu0 %v2890_v61 }
 0xcc2   : > { %v1837_v34 = vpop.f32.mrb[24].mxu0 }
 0xcc3   : > { %v1843_v36 = vadd.f32 %v1837_v34, %v1684_v18  ;;  %v2610_v37 = vpop.f32.mrb[25].mxu0 }
 0xcc4   : > { %v1840_v38 = vpop.f32.mrb[26].mxu0 }
 0xcc5   : > { %v1851_v39 = vadd.f32 %v2456_v35, %v1843_v36  ;;  %v2611_v40 = vpop.f32.mrb[27].mxu0 }
 0xcc7   : > { %v1852_v41 = vadd.f32 %v1851_v39, %v4392_v7 }
 0xcc9   : > { %v1855_v42 = vsel %vm1017_vm1, %v1852_v41, 0.0 }
 0xcca   : > { %1856 = vadd.xlane.f32.xlu1 %v1855_v42 }
 0xd57   : > { %v1857_v43 = vpop.xlane.xlu1 %1856 }
 0xd58   : > { %v1859_v44 = vmul.f32 0.03125, %v1857_v43 }
 0xd5a   : > { %v1860_v45 = vsub.f32 %v1852_v41, %v1859_v44 }
 0xd5c   : > { %v1861_v46 = vmul.f32 %v1860_v45, %v1860_v45 }
 0xd5e   : > { %v1862_v47 = vsel %vm1017_vm1, %v1861_v46, 0.0 }
 0xd5f   : > { %1863 = vadd.xlane.f32.xlu0 %v1862_v47 }
 0xdec   : > { %v1864_v7 = vpop.xlane.xlu0 %1863 }
 0xded   : > { %v1865_v52 = vmul.f32 0.03125, %v1864_v7 }
 0xdef   : > { %v1866_v53 = vadd.f32 1e-05, %v1865_v52 }
 0xdf1   : > { %2907 = vrsqrt.f32 %v1866_v53 }
 0xdfb   : > { %v2908_v54 = vpop.eup %2907 }
 0xdfc   : > { %v1868_v56 = vmul.f32 %v2908_v54, %v1860_v45 }
 0xdfe   : > { %v1875_v58 = vmul.f32 %v2457_v55, %v1868_v56 }
 0xe00   : > { %v1882_v59 = vadd.f32 %v2458_v57, %v1875_v58 }
 0xe02   : > { %v1883_v30 = vpack.c.bf16 %v1882_v59, %v1882_v59 }
 0xe04   : > { %2617 = vmatmul.mubr.msk.bf16.vlgmr.msra.gmra.mrb[32].mxu1 %vm1017_vm1, %v1883_v30 }
 0xed7   : > { %v1944_v63 = vpop.f32.mrb[32].mxu1 }
 0xed8   : > { %v1945_v1 = vadd.f32 %v2459_v62, %v1944_v63  ;;  %v2618_v2 = vpop.f32.mrb[33].mxu1 }
 0xed9   : > { %v1947_v3 = vpop.f32.mrb[34].mxu1 }
 0xeda   : > { %v1950_v4 = vmax.f32 %v1945_v1, 0.0  ;;  %v2619_v5 = vpop.f32.mrb[35].mxu1 }
 0xedc   : > { %v1951_v6 = vpack.c.bf16 %v1950_v4, %v1950_v4 }
 0xede   : > { %2629 = vmatmul.mubr.msk.bf16.vlgmr.msra.gmra.mrb[28].mxu0 %vm1991_vm5, %v1951_v6 }
 0xfb1   : > { %v2029_v9 = vpop.f32.mrb[28].mxu0 }
 0xfb2   : > { %v2030_v10 = vadd.f32 %v2463_v8, %v2029_v9  ;;  %v2630_v11 = vpop.f32.mrb[29].mxu0 }
 0xfb3   : > { %v2032_v12 = vpop.f32.mrb[30].mxu0 }
 0xfb4   : > { %v2631_v13 = vpop.f32.mrb[31].mxu0  ;;  %v2035_v14 = vadd.f32 %v2030_v10, %v1882_v59 }
 0xfb6   : > { %v2038_v0 = vsel %vm1017_vm1, %v2035_v14, 0.0 }
 0xfb7   : > { %2039 = vadd.xlane.f32.xlu0 %v2038_v0 }
0x1044   : > { %v2040_v15 = vpop.xlane.xlu0 %2039 }
0x1045   : > { %v2041_v16 = vmul.f32 0.03125, %v2040_v15 }
0x1047   : > { %v2042_v17 = vsub.f32 %v2035_v14, %v2041_v16 }
0x1049   : > { %v2043_v18 = vmul.f32 %v2042_v17, %v2042_v17 }
0x104b   : > { %v2044_v19 = vsel %vm1017_vm1, %v2043_v18, 0.0 }
0x104c   : > { %2045 = vadd.xlane.f32.xlu0 %v2044_v19 }
0x10d9   : > { %v2046_v20 = vpop.xlane.xlu0 %2045 }
0x10da   : > { %v2047_v21 = vmul.f32 0.03125, %v2046_v20 }
0x10dc   : > { %v2048_v22 = vadd.f32 1e-05, %v2047_v21 }
0x10de   : > { %2909 = vrsqrt.f32 %v2048_v22 }
0x10e8   : > { %v2910_v23 = vpop.eup %2909 }
0x10e9   : > { %v2050_v60 = vmul.f32 %v2910_v23, %v2042_v17 }
0x10eb   : > { %v2057_v26 = vmul.f32 %v2469_v24, %v2050_v60 }
0x10ed   : > { %v2064_v27 = vadd.f32 %v2470_v25, %v2057_v26 }
0x10ef   : > { %2065 = vst.msk [vmem:[%s984_s0] sm:$0xff] %vm1017_vm1, %v2064_v27 }
0x10f0   : > { %3492 = shalt.err (!%p3489_p4)
}
0x10f1   : > { %s3493_s11 = scalar_lea.hbm %s4521_s8, 128  ;;  %s3497_s3 = scalar_lea.hbm %s4721_s10, 256 }
0x10f2   : > { %p3494_p13 = scmp.ne.s32.totalorder %s4521_s8, %s3493_s11  ;;  %p3498_p7 = scmp.lt.u32.totalorder %s4521_s8, %s4721_s10 }
0x10f3   : > { %p3499_p8 = scmp.lt.u32.totalorder %s3497_s3, %s3493_s11  ;;  %p3501_p6 = scmp.lt.u32.totalorder %s3493_s11, %s4521_s8 }
0x10f4   : > { %p3495_p3 = pnand %p3494_p13, %p4722_p9 }
0x10f5   : > { %p3500_p12 = por %p3499_p8, %p3498_p7 }
0x10f6   : > { %p3496_p11 = pneg %p3495_p3 }
0x10f7   : > { %p3502_p0 = por %p3501_p6, %p3500_p12 }
0x10f9   : > { %p3503_p1 = pnand %p3502_p0, %p3496_p11 }
0x10fb   : > { %3506 = shalt.err (!%p3503_p1)
}
0x10fc   : > { %2704 = dma.vmem_to_hbm [thread:$0]  (%p4722_p9), %s4523_s15, 128, %s4521_s8, %s2067_s27  }
0x10fd PF: > { %s2093_s28 = sand.u32 1, %s3585_s1   ;;  %p4723_p10 = scmp.ne.s32.totalorder %s4674_s29, 0 }
0x10fe   : > { %p4724_p5 = scmp.ge.s32.totalorder %s3605_s25, 2  ;;  %s2094_s24 = scalar_lea.sflag [#allocation6], %s2093_s28 }
0x1100   : > { %p2769_p2 = pnand %p4724_p5, %p4723_p10 }
0x1102   : > { %3580 = dma.done.wait (!%p2769_p2), %s2094_s24, 128  }
0x1103   : > { %3582 = vsyncadd (!%p2769_p2), %s2094_s24, 4294967168  ;;  %s50_s25 = sadd.s32 1, %s3605_s25   ;;  %s4725_s26 = sld [smem:[#allocation54_spill]] }
0x1104   : > { %p47_p4 = scmp.ge.s32.totalorder %s50_s25, 4   ;;  %s4726_s24 = sld [smem:[#allocation51_spill]] }
0x1105   : > { %s4727_s2 = sld [smem:[#allocation53_spill]]  ;;  %s4728_s1 = smov %s3589_s22 }
0x1106   : > { %s4729_s22 = smov %s3593_s23  ;;  %49 = sbr.rel (!%p47_p4) target bundleno = 40 (0x28), region = 250 }
0x1109   : > { %s4730_s23 = smov %s4725_s26 }
0x110d   :  { %2099 = vsyncpa [#allocation5], 1 }
0x110e   :  { %2101 = vsyncpa [#allocation5 + $0x1], 1 }
0x110f   :  { %2102 = vsyncpa [#allocation8], 1 }
0x1110   :  { %2104 = vsyncpa [#allocation8 + $0x1], 1 }
0x1111   :  { %2105 = vsyncpa [#allocation11], 1 }
0x1112   :  { %2107 = vsyncpa [#allocation11 + $0x1], 1 }
0x1113   :  { %2108 = vsyncpa [#allocation14], 1 }
0x1114   :  { %2109 = vsyncpa [#allocation17], 1 }
0x1115   :  { %2110 = vsyncpa [#allocation20], 1 }
0x1116   :  { %2111 = vsyncpa [#allocation23], 1 }
0x1117   :  { %2112 = vsyncpa [#allocation26], 1 }
0x1118   :  { %2113 = vsyncpa [#allocation29], 1 }
0x1119   :  { %2114 = vsyncpa [#allocation32], 1 }
0x111a   :  { %2115 = vsyncpa [#allocation35], 1 }
0x111b   :  { %2116 = vsyncpa [#allocation6], 1 }
0x111c   :  { %2118 = vsyncpa [#allocation6 + $0x1], 1 }

</bundles_post_ra>
